<compile_context>
chip_gen: v5e
topology: v5e:2x2
jax: 0.10.0
libtpu: 0.0.40
codegen_flags: <defaults>
</compile_context>

<pallas_src>
import jax
import jax.numpy as jnp
from jax.experimental import pallas as pl
from jax.experimental.pallas import tpu as pltpu

SELU_ALPHA = 1.6732632423543772
SELU_SCALE = 1.0507009873554805

F_PAD = 128          # padded lane width for every feature dimension
HIDDEN4 = 36         # true width after conv4 (softmax must mask padded lanes)
NUM_LAYERS = 6       # 4 GCN weights + lin1 + lin2 packed in the weight slab


def _selu(x):
    return SELU_SCALE * jnp.where(x > 0, x, SELU_ALPHA * (jnp.exp(x) - 1.0))


# ---------------------------------------------------------------------------
# Kernel: one grid step = one independent graph-batch (block-diag adjacency).
# ---------------------------------------------------------------------------
def ggnet_kernel(a_ref, p_ref, x_ref, w_ref, b_ref, out_ref):
    a = a_ref[0]          # (N_pad, N_pad) normalized adjacency (padded w/ zeros)
    h = x_ref[0]          # (N_pad, 128)   node features (lane-padded)

    def gcn(h, layer):
        w = w_ref[layer * F_PAD:(layer + 1) * F_PAD, :]     # static slice (128,128)
        b = b_ref[layer:layer + 1, :]                       # static slice (1,128)
        xw = jnp.dot(h, w, preferred_element_type=jnp.float32)
        return jnp.dot(a, xw, preferred_element_type=jnp.float32) + b

    h = _selu(gcn(h, 0))   # true width 15 (lanes 15..127 stay exactly 0)
    h = _selu(gcn(h, 1))   # 20
    h = _selu(gcn(h, 2))   # 27
    h = _selu(gcn(h, 3))   # 36

    # global_add_pool: (G_pad, N_pad) @ (N_pad, 128) -> (G_pad, 128)
    pooled = jnp.dot(p_ref[0], h, preferred_element_type=jnp.float32)

    # softmax over the *valid* 36 feature lanes only (padded lanes masked out)
    lane = jax.lax.broadcasted_iota(jnp.int32, pooled.shape, 1)
    masked = jnp.where(lane < HIDDEN4, pooled, -1e30)
    m = jnp.max(masked, axis=1, keepdims=True)
    e = jnp.exp(masked - m)
    s = e * pl.reciprocal(jnp.sum(e, axis=1, keepdims=True), approx=True)

    # lin1 -> relu -> (dropout=id) -> lin2 -> relu -> (dropout=id)
    y = jnp.dot(s, w_ref[4 * F_PAD:5 * F_PAD, :],
                preferred_element_type=jnp.float32) + b_ref[4:5, :]
    y = jnp.maximum(y, 0.0)
    y = jnp.dot(y, w_ref[5 * F_PAD:6 * F_PAD, :],
                preferred_element_type=jnp.float32) + b_ref[5:6, :]
    y = jnp.maximum(y, 0.0)

    out_ref[0] = y         # lane-dense (G_pad, 128) store


# ---------------------------------------------------------------------------
# Wrapper: batched, padded inputs -> (B, G_pad, 128) padded logits.
# ---------------------------------------------------------------------------
def google_graph_net(a_hat_b, pool_b, x_b, w_slab, b_slab):
    B, n_pad, _ = a_hat_b.shape
    g_pad = pool_b.shape[1]
    return pl.pallas_call(
        ggnet_kernel,
        out_shape=jax.ShapeDtypeStruct((B, g_pad, F_PAD), jnp.float32),
        grid_spec=pltpu.PrefetchScalarGridSpec(
            num_scalar_prefetch=0,
            grid=(B,),
            in_specs=[
                pl.BlockSpec((1, n_pad, n_pad), lambda b: (b, 0, 0)),
                pl.BlockSpec((1, g_pad, n_pad), lambda b: (b, 0, 0)),
                pl.BlockSpec((1, n_pad, F_PAD), lambda b: (b, 0, 0)),
                # parameter slabs: constant block index -> resident, DMA'd once
                pl.BlockSpec((NUM_LAYERS * F_PAD, F_PAD), lambda b: (0, 0)),
                pl.BlockSpec((8, F_PAD), lambda b: (0, 0)),
            ],
            out_specs=pl.BlockSpec((1, g_pad, F_PAD), lambda b: (b, 0, 0)),
        ),
        compiler_params=pltpu.CompilerParams(
            dimension_semantics=("parallel",)),   # shards batches across TCs (v7x)
    )(a_hat_b, pool_b, x_b, w_slab, b_slab)


# ---------------------------------------------------------------------------
# Host-side graph / parameter preparation.
# ---------------------------------------------------------------------------
def build_normalized_adjacency(edge_index, num_nodes):
    """Dense D^{-1/2}(A + 2I)D^{-1/2}, matching PyG gcn_norm with improved=True:
    existing self-loops are replaced by fill value 2.0, duplicate edges kept."""
    src, dst = edge_index
    not_self = (src != dst).astype(jnp.float32)
    a = jnp.zeros((num_nodes, num_nodes), jnp.float32)
    a = a.at[dst, src].add(not_self)                     # message flows src -> dst
    a = a + 2.0 * jnp.eye(num_nodes, dtype=jnp.float32)  # improved self loops
    deg = jnp.sum(a, axis=1)
    d_inv_sqrt = jnp.where(deg > 0, 1.0 / jnp.sqrt(deg), 0.0)
    return a * d_inv_sqrt[:, None] * d_inv_sqrt[None, :]


def build_pool_matrix(batch_vec, num_graphs):
    """(G, N) one-hot matrix so that P @ H = global_add_pool(H, batch)."""
    return (batch_vec[None, :] == jnp.arange(num_graphs)[:, None]).astype(jnp.float32)


def _pad2(x, rows, cols):
    return jnp.pad(x, ((0, rows - x.shape[0]), (0, cols - x.shape[1])))


def _round_up(n, m):
    return ((n + m - 1) // m) * m


def prepare_graph_batch(a_hat, pool_mat, x, n_pad, g_pad):
    """Zero-pad one graph-batch to lane/sublane-friendly shapes."""
    a_p = _pad2(a_hat, n_pad, n_pad)
    p_p = _pad2(pool_mat, g_pad, n_pad)
    x_p = _pad2(x, n_pad, F_PAD)
    return a_p, p_p, x_p


def pack_params(params):
    """Pack 6 weight matrices into one (768,128) slab and 6 biases into (8,128)."""
    w_names = ["w1", "w2", "w3", "w4", "lw1", "lw2"]
    b_names = ["b1", "b2", "b3", "b4", "lb1", "lb2"]
    w_slab = jnp.concatenate([_pad2(params[n], F_PAD, F_PAD) for n in w_names], axis=0)
    b_slab = jnp.concatenate(
        [_pad2(params[n], 1, F_PAD) for n in b_names]
        + [jnp.zeros((2, F_PAD), jnp.float32)], axis=0)
    return w_slab, b_slab


def init_params(key, num_node_features, num_classes):
    dims = [(num_node_features, 15), (15, 20), (20, 27), (27, 36)]
    params = {}
    keys = jax.random.split(key, 12)
    for i, (fi, fo) in enumerate(dims):
        params[f"w{i+1}"] = (0.1 * jax.random.normal(keys[2 * i], (fi, fo))
                             ).astype(jnp.float32)
        params[f"b{i+1}"] = (0.1 * jax.random.normal(keys[2 * i + 1], (1, fo))
                             ).astype(jnp.float32)
    params["lw1"] = (0.1 * jax.random.normal(keys[8], (36, 96))).astype(jnp.float32)
    params["lb1"] = (0.1 * jax.random.normal(keys[9], (1, 96))).astype(jnp.float32)
    params["lw2"] = (0.1 * jax.random.normal(keys[10], (96, num_classes))
                     ).astype(jnp.float32)
    params["lb2"] = (0.1 * jax.random.normal(keys[11], (1, num_classes))
                     ).astype(jnp.float32)
    return params


def reference_forward(a_hat, pool_mat, x, params):
    """Pure-JAX reference (unpadded) for correctness check."""
    h = x
    for i in range(4):
        h = _selu(a_hat @ (h @ params[f"w{i+1}"]) + params[f"b{i+1}"])
    pooled = pool_mat @ h
    s = jax.nn.softmax(pooled, axis=1)
    y = jnp.maximum(s @ params["lw1"] + params["lb1"], 0.0)
    y = jnp.maximum(y @ params["lw2"] + params["lb2"], 0.0)
    return y


if __name__ == "__main__":
    NUM_NODE_FEATURES = 4
    NUM_CLASSES = 7
    N = 16          # nodes per graph-batch
    G = 2           # graphs per graph-batch
    E = 32          # directed edges per graph-batch
    B = 2           # independent graph-batches processed per pallas_call (grid axis)

    N_PAD = _round_up(max(N, F_PAD), F_PAD)   # 128: lane-dense adjacency too
    G_PAD = _round_up(G, 8)                   # 8: sublane-aligned pooled rows

    key = jax.random.PRNGKey(0)
    k_p, *bkeys = jax.random.split(key, 1 + B)

    params = init_params(k_p, NUM_NODE_FEATURES, NUM_CLASSES)
    w_slab, b_slab = pack_params(params)

    a_list, p_list, x_list, refs = [], [], [], []
    for bk in bkeys:
        k_x, k_e = jax.random.split(bk, 2)
        x = jax.random.normal(k_x, (N, NUM_NODE_FEATURES), dtype=jnp.float32)
        edge_index = jax.random.randint(k_e, (2, E), 0, N)
        batch_vec = jnp.concatenate(
            [jnp.zeros(N // 2, jnp.int32), jnp.ones(N - N // 2, jnp.int32)])
        a_hat = build_normalized_adjacency(edge_index, N)
        pool_mat = build_pool_matrix(batch_vec, G)
        a_p, p_p, x_p = prepare_graph_batch(a_hat, pool_mat, x, N_PAD, G_PAD)
        a_list.append(a_p)
        p_list.append(p_p)
        x_list.append(x_p)
        refs.append(reference_forward(a_hat, pool_mat, x, params))

    a_b = jnp.stack(a_list)        # (B, 128, 128)
    p_b = jnp.stack(p_list)        # (B, 8, 128)
    x_b = jnp.stack(x_list)        # (B, 128, 128)

    out_padded = google_graph_net(a_b, p_b, x_b, w_slab, b_slab)
    out_padded = jax.block_until_ready(out_padded)
    out = out_padded[:, :G, :NUM_CLASSES]      # strip graph-row / class-lane padding

    ref = jnp.stack(refs)
    assert out.shape == (B, G, NUM_CLASSES) and out.dtype == jnp.float32
    assert jnp.allclose(out, ref, rtol=1e-2, atol=1e-2), (out, ref)
    print("KERNEL_OK")
</pallas_src>

<mosaic_0001>
module attributes {stable_mosaic.version = 11 : i64} {
  func.func @ggnet_kernel(%arg0: i32, %arg1: memref<1x128x128xf32, #tpu.memory_space<vmem>>, %arg2: memref<1x8x128xf32, #tpu.memory_space<vmem>>, %arg3: memref<1x128x128xf32, #tpu.memory_space<vmem>>, %arg4: memref<768x128xf32, #tpu.memory_space<vmem>>, %arg5: memref<8x128xf32, #tpu.memory_space<vmem>>, %arg6: memref<1x8x128xf32, #tpu.memory_space<vmem>>) attributes {dimension_semantics = [#tpu.dimension_semantics<parallel>], iteration_bounds = array<i64: 2>, scalar_prefetch = 0 : i64, scratch_operands = 0 : i64, tpu.core_type = #tpu.core_type<tc>, window_params = [{transform_indices = @transform_0, window_bounds = array<i64: 1, 128, 128>}, {transform_indices = @transform_1, window_bounds = array<i64: 1, 8, 128>}, {transform_indices = @transform_2, window_bounds = array<i64: 1, 128, 128>}, {pipeline_mode = #tpu.pipeline_mode<synchronous>, transform_indices = @transform_3, window_bounds = array<i64: 768, 128>}, {pipeline_mode = #tpu.pipeline_mode<synchronous>, transform_indices = @transform_4, window_bounds = array<i64: 8, 128>}, {transform_indices = @transform_5, window_bounds = array<i64: 1, 8, 128>}]} {
    %c0 = arith.constant 0 : index
    %c0_0 = arith.constant 0 : index
    %c0_1 = arith.constant 0 : index
    %0 = vector.load %arg1[%c0, %c0_0, %c0_1] : memref<1x128x128xf32, #tpu.memory_space<vmem>>, vector<1x128x128xf32>
    %1 = vector.shape_cast %0 : vector<1x128x128xf32> to vector<128x128xf32>
    %c0_2 = arith.constant 0 : index
    %c0_3 = arith.constant 0 : index
    %c0_4 = arith.constant 0 : index
    %2 = vector.load %arg3[%c0_2, %c0_3, %c0_4] : memref<1x128x128xf32, #tpu.memory_space<vmem>>, vector<1x128x128xf32>
    %3 = vector.shape_cast %2 : vector<1x128x128xf32> to vector<128x128xf32>
    %c0_5 = arith.constant 0 : index
    %c0_6 = arith.constant 0 : index
    %4 = vector.load %arg4[%c0_5, %c0_6] : memref<768x128xf32, #tpu.memory_space<vmem>>, vector<128x128xf32>
    %c0_7 = arith.constant 0 : index
    %c0_8 = arith.constant 0 : index
    %5 = vector.load %arg5[%c0_7, %c0_8] : memref<8x128xf32, #tpu.memory_space<vmem>>, vector<1x128xf32>
    %cst = arith.constant dense<0.000000e+00> : vector<128x128xf32>
    %6 = tpu.matmul %3, %4, %cst {dimension_numbers = #tpu.dot_dimension_numbers<[1], [0], [0], [1], [0, 0, 1, 1], [], []>} : vector<128x128xf32>, vector<128x128xf32>, vector<128x128xf32> -> vector<128x128xf32>
    %cst_9 = arith.constant dense<0.000000e+00> : vector<128x128xf32>
    %7 = tpu.matmul %1, %6, %cst_9 {dimension_numbers = #tpu.dot_dimension_numbers<[1], [0], [0], [1], [0, 0, 1, 1], [], []>} : vector<128x128xf32>, vector<128x128xf32>, vector<128x128xf32> -> vector<128x128xf32>
    %8 = vector.broadcast %5 : vector<1x128xf32> to vector<128x128xf32>
    %9 = arith.addf %7, %8 : vector<128x128xf32>
    %cst_10 = arith.constant 0.000000e+00 : f32
    %10 = vector.broadcast %cst_10 : f32 to vector<128x128xf32>
    %11 = arith.cmpf ogt, %9, %10 : vector<128x128xf32>
    %12 = math.exp %9 : vector<128x128xf32>
    %cst_11 = arith.constant 1.000000e+00 : f32
    %13 = vector.broadcast %cst_11 : f32 to vector<128x128xf32>
    %14 = arith.subf %12, %13 : vector<128x128xf32>
    %cst_12 = arith.constant 1.67326319 : f32
    %15 = vector.broadcast %cst_12 : f32 to vector<128x128xf32>
    %16 = arith.mulf %15, %14 : vector<128x128xf32>
    %17 = arith.select %11, %9, %16 : vector<128x128xi1>, vector<128x128xf32>
    %cst_13 = arith.constant 1.05070102 : f32
    %18 = vector.broadcast %cst_13 : f32 to vector<128x128xf32>
    %19 = arith.mulf %18, %17 : vector<128x128xf32>
    %c128 = arith.constant 128 : index
    %c0_14 = arith.constant 0 : index
    %20 = vector.load %arg4[%c128, %c0_14] : memref<768x128xf32, #tpu.memory_space<vmem>>, vector<128x128xf32>
    %c1 = arith.constant 1 : index
    %c0_15 = arith.constant 0 : index
    %21 = vector.load %arg5[%c1, %c0_15] : memref<8x128xf32, #tpu.memory_space<vmem>>, vector<1x128xf32>
    %cst_16 = arith.constant dense<0.000000e+00> : vector<128x128xf32>
    %22 = tpu.matmul %19, %20, %cst_16 {dimension_numbers = #tpu.dot_dimension_numbers<[1], [0], [0], [1], [0, 0, 1, 1], [], []>} : vector<128x128xf32>, vector<128x128xf32>, vector<128x128xf32> -> vector<128x128xf32>
    %cst_17 = arith.constant dense<0.000000e+00> : vector<128x128xf32>
    %23 = tpu.matmul %1, %22, %cst_17 {dimension_numbers = #tpu.dot_dimension_numbers<[1], [0], [0], [1], [0, 0, 1, 1], [], []>} : vector<128x128xf32>, vector<128x128xf32>, vector<128x128xf32> -> vector<128x128xf32>
    %24 = vector.broadcast %21 : vector<1x128xf32> to vector<128x128xf32>
    %25 = arith.addf %23, %24 : vector<128x128xf32>
    %cst_18 = arith.constant 0.000000e+00 : f32
    %26 = vector.broadcast %cst_18 : f32 to vector<128x128xf32>
    %27 = arith.cmpf ogt, %25, %26 : vector<128x128xf32>
    %28 = math.exp %25 : vector<128x128xf32>
    %cst_19 = arith.constant 1.000000e+00 : f32
    %29 = vector.broadcast %cst_19 : f32 to vector<128x128xf32>
    %30 = arith.subf %28, %29 : vector<128x128xf32>
    %cst_20 = arith.constant 1.67326319 : f32
    %31 = vector.broadcast %cst_20 : f32 to vector<128x128xf32>
    %32 = arith.mulf %31, %30 : vector<128x128xf32>
    %33 = arith.select %27, %25, %32 : vector<128x128xi1>, vector<128x128xf32>
    %cst_21 = arith.constant 1.05070102 : f32
    %34 = vector.broadcast %cst_21 : f32 to vector<128x128xf32>
    %35 = arith.mulf %34, %33 : vector<128x128xf32>
    %c256 = arith.constant 256 : index
    %c0_22 = arith.constant 0 : index
    %36 = vector.load %arg4[%c256, %c0_22] : memref<768x128xf32, #tpu.memory_space<vmem>>, vector<128x128xf32>
    %c2 = arith.constant 2 : index
    %c0_23 = arith.constant 0 : index
    %37 = vector.load %arg5[%c2, %c0_23] : memref<8x128xf32, #tpu.memory_space<vmem>>, vector<1x128xf32>
    %cst_24 = arith.constant dense<0.000000e+00> : vector<128x128xf32>
    %38 = tpu.matmul %35, %36, %cst_24 {dimension_numbers = #tpu.dot_dimension_numbers<[1], [0], [0], [1], [0, 0, 1, 1], [], []>} : vector<128x128xf32>, vector<128x128xf32>, vector<128x128xf32> -> vector<128x128xf32>
    %cst_25 = arith.constant dense<0.000000e+00> : vector<128x128xf32>
    %39 = tpu.matmul %1, %38, %cst_25 {dimension_numbers = #tpu.dot_dimension_numbers<[1], [0], [0], [1], [0, 0, 1, 1], [], []>} : vector<128x128xf32>, vector<128x128xf32>, vector<128x128xf32> -> vector<128x128xf32>
    %40 = vector.broadcast %37 : vector<1x128xf32> to vector<128x128xf32>
    %41 = arith.addf %39, %40 : vector<128x128xf32>
    %cst_26 = arith.constant 0.000000e+00 : f32
    %42 = vector.broadcast %cst_26 : f32 to vector<128x128xf32>
    %43 = arith.cmpf ogt, %41, %42 : vector<128x128xf32>
    %44 = math.exp %41 : vector<128x128xf32>
    %cst_27 = arith.constant 1.000000e+00 : f32
    %45 = vector.broadcast %cst_27 : f32 to vector<128x128xf32>
    %46 = arith.subf %44, %45 : vector<128x128xf32>
    %cst_28 = arith.constant 1.67326319 : f32
    %47 = vector.broadcast %cst_28 : f32 to vector<128x128xf32>
    %48 = arith.mulf %47, %46 : vector<128x128xf32>
    %49 = arith.select %43, %41, %48 : vector<128x128xi1>, vector<128x128xf32>
    %cst_29 = arith.constant 1.05070102 : f32
    %50 = vector.broadcast %cst_29 : f32 to vector<128x128xf32>
    %51 = arith.mulf %50, %49 : vector<128x128xf32>
    %c384 = arith.constant 384 : index
    %c0_30 = arith.constant 0 : index
    %52 = vector.load %arg4[%c384, %c0_30] : memref<768x128xf32, #tpu.memory_space<vmem>>, vector<128x128xf32>
    %c3 = arith.constant 3 : index
    %c0_31 = arith.constant 0 : index
    %53 = vector.load %arg5[%c3, %c0_31] : memref<8x128xf32, #tpu.memory_space<vmem>>, vector<1x128xf32>
    %cst_32 = arith.constant dense<0.000000e+00> : vector<128x128xf32>
    %54 = tpu.matmul %51, %52, %cst_32 {dimension_numbers = #tpu.dot_dimension_numbers<[1], [0], [0], [1], [0, 0, 1, 1], [], []>} : vector<128x128xf32>, vector<128x128xf32>, vector<128x128xf32> -> vector<128x128xf32>
    %cst_33 = arith.constant dense<0.000000e+00> : vector<128x128xf32>
    %55 = tpu.matmul %1, %54, %cst_33 {dimension_numbers = #tpu.dot_dimension_numbers<[1], [0], [0], [1], [0, 0, 1, 1], [], []>} : vector<128x128xf32>, vector<128x128xf32>, vector<128x128xf32> -> vector<128x128xf32>
    %56 = vector.broadcast %53 : vector<1x128xf32> to vector<128x128xf32>
    %57 = arith.addf %55, %56 : vector<128x128xf32>
    %cst_34 = arith.constant 0.000000e+00 : f32
    %58 = vector.broadcast %cst_34 : f32 to vector<128x128xf32>
    %59 = arith.cmpf ogt, %57, %58 : vector<128x128xf32>
    %60 = math.exp %57 : vector<128x128xf32>
    %cst_35 = arith.constant 1.000000e+00 : f32
    %61 = vector.broadcast %cst_35 : f32 to vector<128x128xf32>
    %62 = arith.subf %60, %61 : vector<128x128xf32>
    %cst_36 = arith.constant 1.67326319 : f32
    %63 = vector.broadcast %cst_36 : f32 to vector<128x128xf32>
    %64 = arith.mulf %63, %62 : vector<128x128xf32>
    %65 = arith.select %59, %57, %64 : vector<128x128xi1>, vector<128x128xf32>
    %cst_37 = arith.constant 1.05070102 : f32
    %66 = vector.broadcast %cst_37 : f32 to vector<128x128xf32>
    %67 = arith.mulf %66, %65 : vector<128x128xf32>
    %c0_38 = arith.constant 0 : index
    %c0_39 = arith.constant 0 : index
    %c0_40 = arith.constant 0 : index
    %68 = vector.load %arg2[%c0_38, %c0_39, %c0_40] : memref<1x8x128xf32, #tpu.memory_space<vmem>>, vector<1x8x128xf32>
    %69 = vector.shape_cast %68 : vector<1x8x128xf32> to vector<8x128xf32>
    %cst_41 = arith.constant dense<0.000000e+00> : vector<8x128xf32>
    %70 = tpu.matmul %69, %67, %cst_41 {dimension_numbers = #tpu.dot_dimension_numbers<[1], [0], [0], [1], [0, 0, 1, 1], [], []>} : vector<8x128xf32>, vector<128x128xf32>, vector<8x128xf32> -> vector<8x128xf32>
    %71 = tpu.iota {dimensions = array<i32: 1>} : vector<8x128xi32>
    %c36_i32 = arith.constant 36 : i32
    %72 = vector.broadcast %c36_i32 : i32 to vector<8x128xi32>
    %73 = arith.cmpi slt, %71, %72 : vector<8x128xi32>
    %cst_42 = arith.constant -1.000000e+30 : f32
    %74 = vector.broadcast %cst_42 : f32 to vector<8x128xf32>
    %75 = arith.select %73, %70, %74 : vector<8x128xi1>, vector<8x128xf32>
    %cst_43 = arith.constant dense<0xFF800000> : vector<8xf32>
    %76 = vector.multi_reduction <maximumf>, %75, %cst_43 [1] : vector<8x128xf32> to vector<8xf32>
    %77 = vector.shape_cast %76 : vector<8xf32> to vector<8x1xf32>
    %78 = vector.broadcast %77 : vector<8x1xf32> to vector<8x128xf32>
    %79 = arith.subf %75, %78 : vector<8x128xf32>
    %80 = math.exp %79 : vector<8x128xf32>
    %cst_44 = arith.constant dense<0.000000e+00> : vector<8xf32>
    %81 = vector.multi_reduction <add>, %80, %cst_44 [1] : vector<8x128xf32> to vector<8xf32>
    %82 = vector.shape_cast %81 : vector<8xf32> to vector<8x1xf32>
    %83 = tpu.reciprocal %82 {approx = true} : vector<8x1xf32> -> vector<8x1xf32>
    %84 = vector.broadcast %83 : vector<8x1xf32> to vector<8x128xf32>
    %85 = arith.mulf %80, %84 : vector<8x128xf32>
    %c512 = arith.constant 512 : index
    %c0_45 = arith.constant 0 : index
    %86 = vector.load %arg4[%c512, %c0_45] : memref<768x128xf32, #tpu.memory_space<vmem>>, vector<128x128xf32>
    %cst_46 = arith.constant dense<0.000000e+00> : vector<8x128xf32>
    %87 = tpu.matmul %85, %86, %cst_46 {dimension_numbers = #tpu.dot_dimension_numbers<[1], [0], [0], [1], [0, 0, 1, 1], [], []>} : vector<8x128xf32>, vector<128x128xf32>, vector<8x128xf32> -> vector<8x128xf32>
    %c4 = arith.constant 4 : index
    %c0_47 = arith.constant 0 : index
    %88 = vector.load %arg5[%c4, %c0_47] : memref<8x128xf32, #tpu.memory_space<vmem>>, vector<1x128xf32>
    %89 = vector.broadcast %88 : vector<1x128xf32> to vector<8x128xf32>
    %90 = arith.addf %87, %89 : vector<8x128xf32>
    %cst_48 = arith.constant 0.000000e+00 : f32
    %91 = vector.broadcast %cst_48 : f32 to vector<8x128xf32>
    %92 = arith.maximumf %90, %91 : vector<8x128xf32>
    %c640 = arith.constant 640 : index
    %c0_49 = arith.constant 0 : index
    %93 = vector.load %arg4[%c640, %c0_49] : memref<768x128xf32, #tpu.memory_space<vmem>>, vector<128x128xf32>
    %cst_50 = arith.constant dense<0.000000e+00> : vector<8x128xf32>
    %94 = tpu.matmul %92, %93, %cst_50 {dimension_numbers = #tpu.dot_dimension_numbers<[1], [0], [0], [1], [0, 0, 1, 1], [], []>} : vector<8x128xf32>, vector<128x128xf32>, vector<8x128xf32> -> vector<8x128xf32>
    %c5 = arith.constant 5 : index
    %c0_51 = arith.constant 0 : index
    %95 = vector.load %arg5[%c5, %c0_51] : memref<8x128xf32, #tpu.memory_space<vmem>>, vector<1x128xf32>
    %96 = vector.broadcast %95 : vector<1x128xf32> to vector<8x128xf32>
    %97 = arith.addf %94, %96 : vector<8x128xf32>
    %cst_52 = arith.constant 0.000000e+00 : f32
    %98 = vector.broadcast %cst_52 : f32 to vector<8x128xf32>
    %99 = arith.maximumf %97, %98 : vector<8x128xf32>
    %c0_53 = arith.constant 0 : index
    %c0_54 = arith.constant 0 : index
    %c0_55 = arith.constant 0 : index
    %100 = vector.load %arg6[%c0_53, %c0_54, %c0_55] : memref<1x8x128xf32, #tpu.memory_space<vmem>>, vector<1x8x128xf32>
    %101 = vector.shape_cast %100 : vector<1x8x128xf32> to vector<8x128xf32>
    %102 = vector.shape_cast %99 : vector<8x128xf32> to vector<1x8x128xf32>
    tpu.vector_store %arg6[%c0_53, %c0_54, %c0_55], %102 {strides = array<i32>} : memref<1x8x128xf32, #tpu.memory_space<vmem>>, vector<1x8x128xf32>,
    return
  }
  func.func @transform_0(%arg0: i32) -> (i32, i32, i32) {
    %c0_i32 = arith.constant 0 : i32
    %c0_i32_0 = arith.constant 0 : i32
    %c0_i32_1 = arith.constant 0 : i32
    return %arg0, %c0_i32, %c0_i32_0 : i32, i32, i32
  }
  func.func @transform_1(%arg0: i32) -> (i32, i32, i32) {
    %c0_i32 = arith.constant 0 : i32
    %c0_i32_0 = arith.constant 0 : i32
    %c0_i32_1 = arith.constant 0 : i32
    return %arg0, %c0_i32, %c0_i32_0 : i32, i32, i32
  }
  func.func @transform_2(%arg0: i32) -> (i32, i32, i32) {
    %c0_i32 = arith.constant 0 : i32
    %c0_i32_0 = arith.constant 0 : i32
    %c0_i32_1 = arith.constant 0 : i32
    return %arg0, %c0_i32, %c0_i32_0 : i32, i32, i32
  }
  func.func @transform_3(%arg0: i32) -> (i32, i32) {
    %c0_i32 = arith.constant 0 : i32
    %c0_i32_0 = arith.constant 0 : i32
    %c0_i32_1 = arith.constant 0 : i32
    return %c0_i32, %c0_i32_0 : i32, i32
  }
  func.func @transform_4(%arg0: i32) -> (i32, i32) {
    %c0_i32 = arith.constant 0 : i32
    %c0_i32_0 = arith.constant 0 : i32
    %c0_i32_1 = arith.constant 0 : i32
    return %c0_i32, %c0_i32_0 : i32, i32
  }
  func.func @transform_5(%arg0: i32) -> (i32, i32, i32) {
    %c0_i32 = arith.constant 0 : i32
    %c0_i32_0 = arith.constant 0 : i32
    %c0_i32_1 = arith.constant 0 : i32
    return %arg0, %c0_i32, %c0_i32_0 : i32, i32, i32
  }
}

</mosaic_0001>

<bundles_post_ra>
// kernel: tpu_custom_call.1
= control target key start
LH: loop header
LB: loop body
LE: loop exit
PB: predicated region body
PF: predicated region fallthrough
CT: control target
= control target key end

     0   :  { %s2813_s0 = inlined_call_operand.hbm [shape: f32[2,128,128], index: 0, kind: input, shape index: {}]   ;;  %s2814_s1 = inlined_call_operand.hbm [shape: f32[2,8,128], index: 1, kind: input, shape index: {}]   ;;  %s2815_s2 = inlined_call_operand.hbm [shape: f32[2,128,128], index: 2, kind: input, shape index: {}]   ;;  %s2816_s3 = inlined_call_operand.hbm [shape: f32[768,128], index: 3, kind: input, shape index: {}]   ;;  %s2817_s4 = inlined_call_operand.hbm [shape: f32[8,128], index: 4, kind: input, shape index: {}]   ;;  %s2818_s5 = inlined_call_operand.hbm [shape: f32[2,8,128], index: 5, kind: output, shape index: {}]  }
   0x1   :  { %2827 = sst [smem:[#allocation19_spill]] %s2814_s1 }
   0x2   :  { %2828 = sst [smem:[#allocation20_spill]] %s2816_s3 }
   0x3   :  { %2829 = sst [smem:[#allocation21_spill]] %s2817_s4 }
   0x4   :  { %10 = vsyncpa [#allocation3], 0 }
   0x5   :  { %12 = vsyncpa [#allocation3 + $0x1], 0 }
   0x6   :  { %13 = vsyncpa [#allocation6], 0 }
   0x7   :  { %15 = vsyncpa [#allocation6 + $0x1], 0 }
   0x8   :  { %16 = vsyncpa [#allocation9], 0 }
   0x9   :  { %17 = vsyncpa [#allocation4], 0 }
   0xa   :  { %19 = vsyncpa [#allocation4 + $0x1], 0  ;;  %s2270_s18 = smov 0   ;;  %s2272_s19 = smov 0  }
   0xb   :  { %s2274_s20 = smov 0   ;;  %s2276_s21 = smov 0  }
   0xc LB: > { %2830 = sst [smem:[#allocation16_spill]] %s2230_s20  ;;  %s2294_s25 = sadd.s32 4294967295, %s2234_s21   ;;  %s2234_s21 = sphi %s2276_s21, %s2847_s21   ;;  %s2230_s20 = sphi %s2274_s20, %s2849_s20   ;;  %s2226_s19 = sphi %s2272_s19, %s2851_s19   ;;  %s2222_s18 = sphi %s2270_s18, %s2850_s18  }
   0xd   : > { %s2831_s3 = sld [smem:[#allocation20_spill]]  ;;  %p1688_p0 = scmp.ge.s32.totalorder %s2234_s21, 1 }
   0xe   : > { %p2826_p1 = scmp.eq.s32.totalorder %s2294_s25, 0  ;;  %p176_p2 = scmp.lt.s32.totalorder %s2234_s21, 3 }
   0xf   : > { %s2236_s27 = smov [#allocation8]   ;;  %s2819_s30 = smov 128  }
  0x10   : > { %p2299_p3 = pnand %p1688_p0, %p176_p2  ;;  %s189_s28 = sshll.u32 %s2236_s27, 4  ;;  %s190_s28 = int_to_ptr.vmem [resolvable:$true] %s189_s28 }
  0x11   : > { %s2821_s6 = smov 8   ;;  %s1687_s7 = sadd.s32 4294967294, %s2234_s21  }
  0x12   : > { %p1793_p4 = pneg %p2299_p3  ;;  %s2319_s8 = sadd.s32 1, %s2234_s21  }
  0x13   : > { %s187_s24 = sshll.u32 %s2831_s3, 4  ;;  %2834 = sst [smem:[#allocation17_spill]] %s2319_s8  ;;  %s188_s24 = int_to_ptr.hbm [resolvable:$true] %s187_s24 }
  0x14   : > { %p2308_p6 = pnand %p1793_p4, %p2826_p1  ;;  %s32_s9 = sadd.s32 1, %s2230_s20 }
  0x15   : > { %s29_s10 = ssub.s32 %s2234_s21, %s2319_s8  ;;  %p39_p7 = scmp.ne.s32.totalorder %s2230_s20, %s2226_s19 }
  0x16   : > { %1796 = dma.hbm_to_vmem [thread:$0]  (!%p2308_p6), %s188_s24, 12288, %s190_s28, [#allocation9], %s2819_s30, %s2819_s30, %s2821_s6  }
  0x17   : > { %p30_p8 = scmp.eq.s32.totalorder %s29_s10, 0  ;;  %p40_p9 = scmp.eq.s32.totalorder %s2234_s21, 0 }
  0x18   : > { %p45_p10 = scmp.ne.s32.totalorder %s2226_s19, %s2222_s18  ;;  %p163_p11 = scmp.eq.s32.totalorder %s2294_s25, 1 }
  0x19   : > { %s2331_s11 = scalar_select %p30_p8, %s2230_s20, %s32_s9  }
  0x1a   : > { %p41_p12 = por %p40_p9, %p39_p7  ;;  %p2335_p13 = por %p2826_p1, %p45_p10 }
  0x1b   : > { %2835 = sst [smem:[#allocation18_spill]] %s2331_s11  ;;  %p2339_p0 = por %p163_p11, %p39_p7 }
  0x1c   : > { %p169_p2 = scmp.eq.s32.totalorder %s1687_s7, 1  ;;  %p1816_p4 = scmp.lt.s32.totalorder %s2234_s21, 2 }
  0x1d   : > { %s2345_s14 = sand.u32 1, %s2230_s20   ;;  %s237_s22 = sand.u32 1, %s2234_s21  }
  0x1e   : > { %p2347_p5 = por %p169_p2, %p45_p10  ;;  %s1692_s16 = sshll.u32 %s2345_s14, 7 }
  0x1f   : > { %p2352_p8 = pnand %p1816_p4, %p41_p12  ;;  %s1695_s23 = sshll.u32 %s2345_s14, 3 }
  0x20   : > { %s1696_s24 = sshll.u32 %s2234_s21, 3  ;;  %s241_s27 = scalar_lea.vmem [#allocation5], %s1695_s23 }
  0x21   : > { %s249_s28 = sshll.u32 %s241_s27, 4  ;;  %s2840_s1 = sld [smem:[#allocation19_spill]]  ;;  %s250_s28 = int_to_ptr.vmem [resolvable:$true] %s249_s28 }
  0x22   : > { %s260_s6 = scalar_lea.vmem [#allocation7], %s1692_s16  ;;  %s2364_s11 = scalar_lea.sflag [#allocation6], %s237_s22 }
  0x23   : > { %s268_s3 = sshll.u32 %s260_s6, 4  ;;  %p2044_p9 = pneg %p2352_p8  ;;  %s2380_s3 = int_to_ptr.vmem [resolvable:$true] %s268_s3 }
  0x27   : > { %s245_s10 = scalar_lea.hbm %s2840_s1, %s1696_s24  ;;  %s2047_s27 = scalar_lea.hbm %s2840_s1, 16 }
  0x28   : > { %s247_s30 = sshll.u32 %s245_s10, 4  ;;  %s248_s30 = int_to_ptr.hbm [resolvable:$true] %s247_s30 }
  0x29   : > { %s2040_s20 = sshra.s32 %s248_s30, 4  ;;  %s2041_s20 = int_to_ptr.hbm [resolvable:$true] %s2040_s20 }
  0x2a   : > { %s2042_s8 = scalar_lea.hbm %s2041_s20, 8  ;;  %p2048_p12 = scmp.lt.s32.totalorder %s2041_s20, %s2840_s1 }
  0x2b   : > { %p2043_p7 = scmp.ne.s32.totalorder %s2041_s20, %s2042_s8  ;;  %p2049_p2 = scmp.lt.s32.totalorder %s2047_s27, %s2042_s8 }
  0x2d   : > { %p2045_p10 = pnand %p2044_p9, %p2043_p7  ;;  %p2050_p4 = por %p2049_p2, %p2048_p12 }
  0x2f   : > { %p2046_p11 = pneg %p2045_p10 }
  0x31   : > { %p2051_p1 = pnand %p2050_p4, %p2046_p11 }
  0x33   : > { %2054 = shalt.err (!%p2051_p1)
}
  0x34   : > { %1806 = dma.hbm_to_vmem [thread:$0]  (!%p2352_p8), %s248_s30, 128, %s250_s28, %s2364_s11  }
  0x35   : > { %s2841_s4 = sld [smem:[#allocation21_spill]]  ;;  %s2239_s20 = smov [#allocation10]  }
  0x36   : > { %s204_s8 = sshll.u32 %s2239_s20, 4  ;;  %s1775_s23 = sshll.u32 %s2234_s21, 7  ;;  %s205_s8 = int_to_ptr.vmem [resolvable:$true] %s204_s8 }
  0x37   : > { %s219_s24 = scalar_lea.vmem [#allocation2], %s1692_s16  ;;  %s224_s28 = scalar_lea.hbm %s2813_s0, %s1775_s23 }
  0x38   : > { %s227_s27 = sshll.u32 %s219_s24, 4  ;;  %s225_s9 = sshll.u32 %s224_s28, 4  ;;  %s228_s27 = int_to_ptr.vmem [resolvable:$true] %s227_s27  ;;  %s226_s9 = int_to_ptr.hbm [resolvable:$true] %s225_s9 }
  0x39   : > { %s265_s1 = scalar_lea.hbm %s2815_s2, %s1775_s23  ;;  %s2100_s29 = sshra.s32 %s226_s9, 4  ;;  %s2101_s29 = int_to_ptr.hbm [resolvable:$true] %s2100_s29 }
  0x3a   : > { %s266_s20 = sshll.u32 %s265_s1, 4  ;;  %s2107_s24 = scalar_lea.hbm %s2813_s0, 256  ;;  %s267_s20 = int_to_ptr.hbm [resolvable:$true] %s266_s20 }
  0x3b   : > { %s202_s10 = sshll.u32 %s2841_s4, 4  ;;  %s216_s4 = scalar_lea.sflag [#allocation3], %s2345_s14  ;;  %s203_s10 = int_to_ptr.hbm [resolvable:$true] %s202_s10 }
  0x3c   : > { %1799 = dma.hbm_to_vmem [thread:$0]  (!%p2308_p6), %s203_s10, 128, %s205_s8, [#allocation9]  }
  0x3d   : > { %s2102_s10 = scalar_lea.hbm %s2101_s29, 128  ;;  %p2108_p10 = scmp.lt.s32.totalorder %s2101_s29, %s2813_s0 }
  0x3e   : > { %p2103_p1 = scmp.ne.s32.totalorder %s2101_s29, %s2102_s10  ;;  %p2109_p11 = scmp.lt.s32.totalorder %s2107_s24, %s2102_s10 }
  0x40   : > { %p2105_p6 = pnand %p2103_p1, %p2044_p9  ;;  %p2110_p12 = por %p2109_p11, %p2108_p10 }
  0x42   : > { %p2106_p7 = pneg %p2105_p6 }
  0x44   : > { %p2111_p2 = pnand %p2110_p12, %p2106_p7 }
  0x46   : > { %2114 = shalt.err (!%p2111_p2)
}
  0x47   : > { %s2842_s1 = smov 8   ;;  %s2843_s14 = smov 128  }
  0x48   : > { %1803 = dma.hbm_to_vmem [thread:$0]  (!%p2352_p8), %s226_s9, 2048, %s228_s27, %s216_s4, %s2843_s14, %s2843_s14, %s2842_s1  }
  0x49   : > { %s2130_s23 = sshra.s32 %s267_s20, 4  ;;  %s2137_s29 = scalar_lea.hbm %s2815_s2, 256  ;;  %s2131_s23 = int_to_ptr.hbm [resolvable:$true] %s2130_s23 }
  0x4a   : > { %s2132_s28 = scalar_lea.hbm %s2131_s23, 128  ;;  %p2138_p7 = scmp.lt.s32.totalorder %s2131_s23, %s2815_s2 }
  0x4b   : > { %p2133_p4 = scmp.ne.s32.totalorder %s2131_s23, %s2132_s28  ;;  %p2139_p10 = scmp.lt.s32.totalorder %s2137_s29, %s2132_s28 }
  0x4d   : > { %p2135_p1 = pnand %p2133_p4, %p2044_p9  ;;  %p2140_p11 = por %p2139_p10, %p2138_p7 }
  0x4f   : > { %p2136_p6 = pneg %p2135_p1 }
  0x51   : > { %p2141_p12 = pnand %p2140_p11, %p2136_p6 }
  0x53   : > { %2144 = shalt.err (!%p2141_p12)
}
  0x54   : > { %1809 = dma.hbm_to_vmem [thread:$0]  (!%p2352_p8), %s267_s20, 2048, %s2380_s3, %s2364_s11, %s2843_s14, %s2843_s14, %s2842_s1  }
  0x55   : > { %280 = sbr.rel (%p2299_p3) target bundleno = 2636 (0xa4c), region = 40  ;;  %s2430_s4 = sand.u32 (!%p2299_p3), 1, %s2226_s19  }
  0x56   : > { %s1701_s27 = sshll.u32 (!%p2299_p3), %s2430_s4, 7  ;;  %s283_s9 = scalar_lea.sflag (!%p2299_p3), [#allocation3], %s2430_s4 }
  0x57   : > { %s2434_s8 = scalar_lea.vmem (!%p2299_p3), [#allocation2], %s1701_s27 }
  0x5a   : > { %2205 = dma.done.wait (%p2335_p13), %s283_s9, 2048  }
  0x5b   : > { %2207 = vsyncadd (%p2335_p13), %s283_s9, 4294965248  ;;  %s292_s3 = sand.u32 1, %s2294_s25   ;;  %s1702_s26 = sshll.u32 %s2430_s4, 3 }
  0x5c   : > { %s293_s11 = scalar_lea.sflag [#allocation6], %s292_s3  ;;  %s2444_s17 = scalar_lea.vmem [#allocation5], %s1702_s26 }
  0x5d   : > { %2209 = dma.done.wait (%p2335_p13), %s293_s11, 2176  }
  0x5e   : > { %2211 = vsyncadd (%p2335_p13), %s293_s11, 4294965120  ;;  %s2450_s20 = scalar_lea.vmem [#allocation7], %s1701_s27  ;;  %p2844_p3 = scmp.eq.s32.totalorder %s2294_s25, 0 }
  0x60   : > { %2213 = dma.done.wait (%p2844_p3), [#allocation9], 12416   ;;  %p2845_p8 = pmov %p2844_p3 }
  0x61   : > { %v401_v0 = vld [vmem:[#allocation8 + $0x78] sm:$0xff]  ;;  %v400_v1 = vld [vmem:[#allocation8 + $0x70] sm:$0xff]  ;;  %v399_v2 = vld [vmem:[#allocation8 + $0x68] sm:$0xff]  ;;  %s1772_s12 = sshll.u32 %s2294_s25, 3  ;;  %s353_s1 = scalar_lea.vmem [#allocation11], %s1702_s26 }
  0x62   : > { %2215 = vsyncadd (%p2845_p8), [#allocation9], 4294954880  ;;  %403 = vmatpush.msra.mxu0 %v401_v0  ;;  %v398_v3 = vld [vmem:[#allocation8 + $0x60] sm:$0xff]  ;;  %v397_v4 = vld [vmem:[#allocation8 + $0x58] sm:$0xff]  ;;  %s1550_s30 = scalar_lea.hbm %s2818_s5, %s1772_s12  ;;  %s1552_s14 = sshll.u32 %s353_s1, 4  ;;  %s1553_s14 = int_to_ptr.vmem [resolvable:$true] %s1552_s14 }
  0x63   : > { %v396_v5 = vld [vmem:[#allocation8 + $0x50] sm:$0xff]  ;;  %v395_v6 = vld [vmem:[#allocation8 + $0x48] sm:$0xff]  ;;  %v394_v7 = vld [vmem:[#allocation8 + $0x40] sm:$0xff]  ;;  %s1554_s23 = sshll.u32 %s1550_s30, 4  ;;  %s1540_s28 = scalar_lea.sflag [#allocation4], %s2430_s4  ;;  %s1555_s23 = int_to_ptr.hbm [resolvable:$true] %s1554_s23 }
  0x64   : > { %404 = vmatpush.msra.mxu0 %v400_v1  ;;  %v393_v8 = vld [vmem:[#allocation8 + $0x38] sm:$0xff]  ;;  %v392_v9 = vld [vmem:[#allocation8 + $0x30] sm:$0xff]  ;;  %v391_v10 = vld [vmem:[#allocation8 + $0x28] sm:$0xff]  ;;  %s2174_s6 = sshra.s32 %s1555_s23, 4  ;;  %s2180_s10 = scalar_lea.hbm %s2818_s5, 16  ;;  %s2175_s6 = int_to_ptr.hbm [resolvable:$true] %s2174_s6 }
  0x65   : > { %v390_v11 = vld [vmem:[#allocation8 + $0x20] sm:$0xff]  ;;  %v389_v12 = vld [vmem:[#allocation8 + $0x18] sm:$0xff]  ;;  %v388_v13 = vld [vmem:[#allocation8 + $0x10] sm:$0xff]  ;;  %s2176_s25 = scalar_lea.hbm %s2175_s6, 8  ;;  %p2181_p4 = scmp.lt.s32.totalorder %s2175_s6, %s2818_s5 }
  0x66   : > { %405 = vmatpush.msra.mxu0 %v399_v2  ;;  %v387_v14 = vld [vmem:[#allocation8 + $0x8] sm:$0xff]  ;;  %v386_v15 = vld [vmem:[#allocation8] sm:$0xff]  ;;  %v372_v18 = vld [vmem:[%s2450_s20 + $0x10] sm:$0xff]  ;;  %p2177_p13 = scmp.ne.s32.totalorder %s2175_s6, %s2176_s25  ;;  %p2182_p1 = scmp.lt.s32.totalorder %s2180_s10, %s2176_s25 }
  0x67   : > { %v370_v16 = vld [vmem:[%s2450_s20] sm:$0xff]  ;;  %v371_v17 = vld [vmem:[%s2450_s20 + $0x8] sm:$0xff]  ;;  %v373_v19 = vld [vmem:[%s2450_s20 + $0x18] sm:$0xff] }
  0x68   : > { %406 = vmatpush.msra.mxu0 %v398_v3  ;;  %v374_v20 = vld [vmem:[%s2450_s20 + $0x20] sm:$0xff]  ;;  %v375_v21 = vld [vmem:[%s2450_s20 + $0x28] sm:$0xff]  ;;  %v376_v22 = vld [vmem:[%s2450_s20 + $0x30] sm:$0xff]  ;;  %p2178_p9 = pnand %p2177_p13, %p2339_p0  ;;  %p2183_p6 = por %p2182_p1, %p2181_p4 }
  0x69   : > { %v377_v23 = vld [vmem:[%s2450_s20 + $0x38] sm:$0xff]  ;;  %v378_v24 = vld [vmem:[%s2450_s20 + $0x40] sm:$0xff]  ;;  %v379_v25 = vld [vmem:[%s2450_s20 + $0x48] sm:$0xff] }
  0x6a   : > { %407 = vmatpush.msra.mxu0 %v397_v4  ;;  %v380_v26 = vld [vmem:[%s2450_s20 + $0x50] sm:$0xff]  ;;  %v381_v27 = vld [vmem:[%s2450_s20 + $0x58] sm:$0xff]  ;;  %v382_v28 = vld [vmem:[%s2450_s20 + $0x60] sm:$0xff]  ;;  %p2179_p2 = pneg %p2178_p9 }
  0x6b   : > { %v383_v29 = vld [vmem:[%s2450_s20 + $0x68] sm:$0xff]  ;;  %v384_v30 = vld [vmem:[%s2450_s20 + $0x70] sm:$0xff]  ;;  %v385_v31 = vld [vmem:[%s2450_s20 + $0x78] sm:$0xff] }
  0x6c   : > { %408 = vmatpush.msra.mxu0 %v396_v5  ;;  %v2473_v48 = vld [vmem:[%s2434_s8] sm:$0xff]  ;;  %v2477_v49 = vld [vmem:[%s2434_s8 + $0x8] sm:$0xff]  ;;  %v2481_v50 = vld [vmem:[%s2434_s8 + $0x10] sm:$0xff]  ;;  %p2184_p7 = pnand %p2183_p6, %p2179_p2 }
  0x6d   : > { %v2485_v51 = vld [vmem:[%s2434_s8 + $0x18] sm:$0xff]  ;;  %v2489_v52 = vld [vmem:[%s2434_s8 + $0x20] sm:$0xff]  ;;  %v2493_v53 = vld [vmem:[%s2434_s8 + $0x28] sm:$0xff] }
  0x6e   : > { %409 = vmatpush.msra.mxu0 %v395_v6  ;;  %v2497_v54 = vld [vmem:[%s2434_s8 + $0x30] sm:$0xff]  ;;  %v2501_v55 = vld [vmem:[%s2434_s8 + $0x38] sm:$0xff]  ;;  %v2505_v56 = vld [vmem:[%s2434_s8 + $0x40] sm:$0xff] }
  0x6f   : > { %v2509_v57 = vld [vmem:[%s2434_s8 + $0x48] sm:$0xff]  ;;  %v2513_v58 = vld [vmem:[%s2434_s8 + $0x50] sm:$0xff]  ;;  %v660_v60 = vld [vmem:[#allocation8 + $0xf0] sm:$0xff] }
  0x70   : > { %410 = vmatpush.msra.mxu0 %v394_v7  ;;  %v661_v59 = vld [vmem:[#allocation8 + $0xf8] sm:$0xff]  ;;  %v659_v61 = vld [vmem:[#allocation8 + $0xe8] sm:$0xff]  ;;  %v658_v62 = vld [vmem:[#allocation8 + $0xe0] sm:$0xff] }
  0x71   : > { %663 = vmatpush.msra.mxu2 %v661_v59  ;;  %v2517_v63 = vld [vmem:[%s2434_s8 + $0x58] sm:$0xff]  ;;  %v657_v0 = vld [vmem:[#allocation8 + $0xd8] sm:$0xff]  ;;  %v656_v1 = vld [vmem:[#allocation8 + $0xd0] sm:$0xff] }
  0x72   : > { %411 = vmatpush.msra.mxu0 %v393_v8  ;;  %v655_v2 = vld [vmem:[#allocation8 + $0xc8] sm:$0xff]  ;;  %v2521_v3 = vld [vmem:[%s2434_s8 + $0x60] sm:$0xff]  ;;  %v654_v4 = vld [vmem:[#allocation8 + $0xc0] sm:$0xff] }
  0x73   : > { %664 = vmatpush.msra.mxu2 %v660_v60  ;;  %v653_v5 = vld [vmem:[#allocation8 + $0xb8] sm:$0xff]  ;;  %v652_v6 = vld [vmem:[#allocation8 + $0xb0] sm:$0xff]  ;;  %v651_v7 = vld [vmem:[#allocation8 + $0xa8] sm:$0xff] }
  0x74   : > { %412 = vmatpush.msra.mxu0 %v392_v9  ;;  %v2525_v8 = vld [vmem:[%s2434_s8 + $0x68] sm:$0xff]  ;;  %v650_v9 = vld [vmem:[#allocation8 + $0xa0] sm:$0xff] }
  0x75   : > { %665 = vmatpush.msra.mxu2 %v659_v61 }
  0x76   : > { %413 = vmatpush.msra.mxu0 %v391_v10  ;;  %v649_v10 = vld [vmem:[#allocation8 + $0x98] sm:$0xff] }
  0x77   : > { %666 = vmatpush.msra.mxu2 %v658_v62 }
  0x78   : > { %414 = vmatpush.msra.mxu0 %v390_v11  ;;  %v648_v11 = vld [vmem:[#allocation8 + $0x90] sm:$0xff] }
  0x79   : > { %667 = vmatpush.msra.mxu2 %v657_v0 }
  0x7a   : > { %415 = vmatpush.msra.mxu0 %v389_v12  ;;  %v647_v12 = vld [vmem:[#allocation8 + $0x88] sm:$0xff] }
  0x7b   : > { %668 = vmatpush.msra.mxu2 %v656_v1 }
  0x7c   : > { %416 = vmatpush.msra.mxu0 %v388_v13  ;;  %v2529_v13 = vld [vmem:[%s2434_s8 + $0x70] sm:$0xff] }
  0x7d   : > { %669 = vmatpush.msra.mxu2 %v655_v2 }
  0x7e   : > { %417 = vmatpush.msra.mxu0 %v387_v14  ;;  %v646_v14 = vld [vmem:[#allocation8 + $0x80] sm:$0xff] }
  0x7f   : > { %670 = vmatpush.msra.mxu2 %v654_v4 }
  0x80   : > { %418 = vmatpush.msra.mxu0 %v386_v15  ;;  %v2533_v15 = vld [vmem:[%s2434_s8 + $0x78] sm:$0xff] }
  0x81   : > { %419 = vmatmul.f32.vlgmr.msra.gmra.mxu0 %v370_v16  ;;  %671 = vmatpush.msra.mxu2 %v653_v5  ;;  %v2536_v16 = vld [vmem:[#allocation10] ss:$0 sm:$0xff] }
  0x83   : > { %672 = vmatpush.msra.mxu2 %v652_v6 }
  0x85   : > { %673 = vmatpush.msra.mxu2 %v651_v7 }
  0x87   : > { %674 = vmatpush.msra.mxu2 %v650_v9 }
  0x89   : > { %422 = vmatmul.f32.gmra.mxu0 %v371_v17  ;;  %675 = vmatpush.msra.mxu2 %v649_v10 }
  0x8b   : > { %676 = vmatpush.msra.mxu2 %v648_v11 }
  0x8d   : > { %677 = vmatpush.msra.mxu2 %v647_v12 }
  0x8f   : > { %678 = vmatpush.msra.mxu2 %v646_v14 }
  0x91   : > { %425 = vmatmul.f32.gmra.mxu0 %v372_v18 }
  0x99   : > { %428 = vmatmul.f32.gmra.mxu0 %v373_v19 }
  0xa1   : > { %431 = vmatmul.f32.gmra.mxu0 %v374_v20 }
  0xa9   : > { %434 = vmatmul.f32.gmra.mxu0 %v375_v21 }
  0xb1   : > { %437 = vmatmul.f32.gmra.mxu0 %v376_v22 }
  0xb9   : > { %440 = vmatmul.f32.gmra.mxu0 %v377_v23 }
  0xc1   : > { %443 = vmatmul.f32.gmra.mxu0 %v378_v24 }
  0xc9   : > { %446 = vmatmul.f32.gmra.mxu0 %v379_v25 }
  0xd1   : > { %449 = vmatmul.f32.gmra.mxu0 %v380_v26 }
  0xd9   : > { %452 = vmatmul.f32.gmra.mxu0 %v381_v27 }
  0xe1   : > { %455 = vmatmul.f32.gmra.mxu0 %v382_v28 }
  0xe9   : > { %458 = vmatmul.f32.gmra.mxu0 %v383_v29 }
  0xf1   : > { %461 = vmatmul.f32.gmra.mxu0 %v384_v30 }
  0xf9   : > { %464 = vmatmul.f32.gmra.mxu0 %v385_v31 }
  0xfe   : > { %v420_v32 = vpop.f32.mrf.mxu0 }
 0x106   : > { %v423_v33 = vpop.f32.mrf.mxu0 }
 0x10e   : > { %v426_v34 = vpop.f32.mrf.mxu0 }
 0x116   : > { %v429_v35 = vpop.f32.mrf.mxu0 }
 0x11e   : > { %v432_v36 = vpop.f32.mrf.mxu0 }
 0x126   : > { %v435_v37 = vpop.f32.mrf.mxu0 }
 0x12e   : > { %v438_v38 = vpop.f32.mrf.mxu0 }
 0x136   : > { %v441_v39 = vpop.f32.mrf.mxu0 }
 0x13e   : > { %v444_v40 = vpop.f32.mrf.mxu0 }
 0x146   : > { %v447_v41 = vpop.f32.mrf.mxu0 }
 0x14e   : > { %v450_v42 = vpop.f32.mrf.mxu0 }
 0x156   : > { %v453_v43 = vpop.f32.mrf.mxu0 }
 0x15e   : > { %v456_v44 = vpop.f32.mrf.mxu0 }
 0x166   : > { %v459_v45 = vpop.f32.mrf.mxu0 }
 0x16e   : > { %v462_v46 = vpop.f32.mrf.mxu0 }
 0x176   : > { %v465_v47 = vpop.f32.mrf.mxu0 }
 0x177   : > { %469 = vmatpush.msra.mxu1 %v465_v47 }
 0x179   : > { %470 = vmatpush.msra.mxu1 %v462_v46 }
 0x17b   : > { %471 = vmatpush.msra.mxu1 %v459_v45 }
 0x17d   : > { %472 = vmatpush.msra.mxu1 %v456_v44 }
 0x17f   : > { %473 = vmatpush.msra.mxu1 %v453_v43 }
 0x181   : > { %474 = vmatpush.msra.mxu1 %v450_v42 }
 0x183   : > { %475 = vmatpush.msra.mxu1 %v447_v41 }
 0x185   : > { %476 = vmatpush.msra.mxu1 %v444_v40 }
 0x187   : > { %477 = vmatpush.msra.mxu1 %v441_v39 }
 0x189   : > { %478 = vmatpush.msra.mxu1 %v438_v38 }
 0x18b   : > { %479 = vmatpush.msra.mxu1 %v435_v37 }
 0x18d   : > { %480 = vmatpush.msra.mxu1 %v432_v36 }
 0x18f   : > { %481 = vmatpush.msra.mxu1 %v429_v35 }
 0x191   : > { %482 = vmatpush.msra.mxu1 %v426_v34 }
 0x193   : > { %483 = vmatpush.msra.mxu1 %v423_v33 }
 0x195   : > { %484 = vmatpush.msra.mxu1 %v420_v32 }
 0x196   : > { %485 = vmatmul.f32.vlgmr.msra.gmra.mxu1 %v2473_v48 }
 0x19e   : > { %488 = vmatmul.f32.gmra.mxu1 %v2477_v49 }
 0x1a6   : > { %491 = vmatmul.f32.gmra.mxu1 %v2481_v50 }
 0x1ae   : > { %494 = vmatmul.f32.gmra.mxu1 %v2485_v51 }
 0x1b6   : > { %497 = vmatmul.f32.gmra.mxu1 %v2489_v52 }
 0x1be   : > { %500 = vmatmul.f32.gmra.mxu1 %v2493_v53 }
 0x1c6   : > { %503 = vmatmul.f32.gmra.mxu1 %v2497_v54 }
 0x1ce   : > { %506 = vmatmul.f32.gmra.mxu1 %v2501_v55 }
 0x1d6   : > { %509 = vmatmul.f32.gmra.mxu1 %v2505_v56 }
 0x1de   : > { %512 = vmatmul.f32.gmra.mxu1 %v2509_v57 }
 0x1e6   : > { %515 = vmatmul.f32.gmra.mxu1 %v2513_v58 }
 0x1ee   : > { %518 = vmatmul.f32.gmra.mxu1 %v2517_v63 }
 0x1f6   : > { %521 = vmatmul.f32.gmra.mxu1 %v2521_v3 }
 0x1fe   : > { %524 = vmatmul.f32.gmra.mxu1 %v2525_v8 }
 0x206   : > { %527 = vmatmul.f32.gmra.mxu1 %v2529_v13 }
 0x20e   : > { %530 = vmatmul.f32.gmra.mxu1 %v2533_v15 }
 0x213   : > { %v486_v17 = vpop.f32.mrf.mxu1 }
 0x214   : > { %v487_v18 = vadd.f32 %v2536_v16, %v486_v17 }
 0x216   : > { %v550_v19 = vmul.f32 1.442695, %v487_v18  ;;  %vm534_vm0 = vcmp.gt.f32.partialorder %v487_v18, 0.0 }
 0x218   : > { %1862 = vpow2.f32 %v550_v19 }
 0x21b   : > { %v489_v20 = vpop.f32.mrf.mxu1 }
 0x21c   : > { %v490_v21 = vadd.f32 %v2536_v16, %v489_v20 }
 0x21e   : > { %v1863_v22 = vpop.eup %1862  ;;  %v552_v23 = vmul.f32 1.442695, %v490_v21  ;;  %vm535_vm1 = vcmp.gt.f32.partialorder %v490_v21, 0.0 }
 0x21f   : > { %v1707_v24 = vadd.f32 -1.0, %v1863_v22 }
 0x220   : > { %1864 = vpow2.f32 %v552_v23 }
 0x221   : > { %v598_v25 = vmul.f32 1.6732632, %v1707_v24 }
 0x223   : > { %v492_v26 = vpop.f32.mrf.mxu1  ;;  %v614_v27 = vsel %vm534_vm0, %v487_v18, %v598_v25 }
 0x224   : > { %v493_v28 = vadd.f32 %v2536_v16, %v492_v26  ;;  %v630_v29 = vmul.f32 1.050701, %v614_v27 }
 0x226   : > { %v1865_v30 = vpop.eup %1864  ;;  %v554_v31 = vmul.f32 1.442695, %v493_v28  ;;  %679 = vmatmul.f32.vlgmr.msra.gmra.mxu2 %v630_v29  ;;  %vm536_vm2 = vcmp.gt.f32.partialorder %v493_v28, 0.0 }
 0x227   : > { %v1708_v32 = vadd.f32 -1.0, %v1865_v30 }
 0x228   : > { %1866 = vpow2.f32 %v554_v31 }
 0x229   : > { %v599_v33 = vmul.f32 1.6732632, %v1708_v32 }
 0x22b   : > { %v495_v34 = vpop.f32.mrf.mxu1  ;;  %v615_v35 = vsel %vm535_vm1, %v490_v21, %v599_v33 }
 0x22c   : > { %v496_v36 = vadd.f32 %v2536_v16, %v495_v34  ;;  %v631_v37 = vmul.f32 1.050701, %v615_v35 }
 0x22e   : > { %v1867_v38 = vpop.eup %1866  ;;  %v556_v39 = vmul.f32 1.442695, %v496_v36  ;;  %682 = vmatmul.f32.gmra.mxu2 %v631_v37  ;;  %vm537_vm3 = vcmp.gt.f32.partialorder %v496_v36, 0.0 }
 0x22f   : > { %v1709_v40 = vadd.f32 -1.0, %v1867_v38 }
 0x230   : > { %1868 = vpow2.f32 %v556_v39 }
 0x231   : > { %v600_v41 = vmul.f32 1.6732632, %v1709_v40 }
 0x233   : > { %v498_v42 = vpop.f32.mrf.mxu1  ;;  %v616_v43 = vsel %vm536_vm2, %v493_v28, %v600_v41 }
 0x234   : > { %v499_v44 = vadd.f32 %v2536_v16, %v498_v42  ;;  %v632_v45 = vmul.f32 1.050701, %v616_v43 }
 0x236   : > { %v1869_v46 = vpop.eup %1868  ;;  %v558_v47 = vmul.f32 1.442695, %v499_v44  ;;  %685 = vmatmul.f32.gmra.mxu2 %v632_v45  ;;  %vm538_vm4 = vcmp.gt.f32.partialorder %v499_v44, 0.0 }
 0x237   : > { %v1710_v59 = vadd.f32 -1.0, %v1869_v46 }
 0x238   : > { %1870 = vpow2.f32 %v558_v47 }
 0x239   : > { %v601_v60 = vmul.f32 1.6732632, %v1710_v59 }
 0x23b   : > { %v501_v61 = vpop.f32.mrf.mxu1  ;;  %v617_v62 = vsel %vm537_vm3, %v496_v36, %v601_v60 }
 0x23c   : > { %v502_v0 = vadd.f32 %v2536_v16, %v501_v61  ;;  %v633_v1 = vmul.f32 1.050701, %v617_v62 }
 0x23e   : > { %v1871_v2 = vpop.eup %1870  ;;  %v560_v4 = vmul.f32 1.442695, %v502_v0  ;;  %688 = vmatmul.f32.gmra.mxu2 %v633_v1  ;;  %vm539_vm5 = vcmp.gt.f32.partialorder %v502_v0, 0.0 }
 0x23f   : > { %v1711_v5 = vadd.f32 -1.0, %v1871_v2 }
 0x240   : > { %1872 = vpow2.f32 %v560_v4 }
 0x241   : > { %v602_v6 = vmul.f32 1.6732632, %v1711_v5 }
 0x243   : > { %v504_v7 = vpop.f32.mrf.mxu1  ;;  %v618_v9 = vsel %vm538_vm4, %v499_v44, %v602_v6 }
 0x244   : > { %v505_v10 = vadd.f32 %v2536_v16, %v504_v7  ;;  %v634_v11 = vmul.f32 1.050701, %v618_v9 }
 0x246   : > { %v1873_v12 = vpop.eup %1872  ;;  %v562_v14 = vmul.f32 1.442695, %v505_v10  ;;  %691 = vmatmul.f32.gmra.mxu2 %v634_v11  ;;  %vm540_vm6 = vcmp.gt.f32.partialorder %v505_v10, 0.0 }
 0x247   : > { %v1712_v17 = vadd.f32 -1.0, %v1873_v12 }
 0x248   : > { %1874 = vpow2.f32 %v562_v14 }
 0x249   : > { %v603_v18 = vmul.f32 1.6732632, %v1712_v17 }
 0x24b   : > { %v507_v19 = vpop.f32.mrf.mxu1  ;;  %v619_v20 = vsel %vm539_vm5, %v502_v0, %v603_v18 }
 0x24c   : > { %v508_v21 = vadd.f32 %v2536_v16, %v507_v19  ;;  %v635_v22 = vmul.f32 1.050701, %v619_v20 }
 0x24e   : > { %v1875_v23 = vpop.eup %1874  ;;  %v564_v24 = vmul.f32 1.442695, %v508_v21  ;;  %694 = vmatmul.f32.gmra.mxu2 %v635_v22  ;;  %vm541_vm7 = vcmp.gt.f32.partialorder %v508_v21, 0.0 }
 0x24f   : > { %v1713_v25 = vadd.f32 -1.0, %v1875_v23 }
 0x250   : > { %1876 = vpow2.f32 %v564_v24 }
 0x251   : > { %v604_v26 = vmul.f32 1.6732632, %v1713_v25 }
 0x253   : > { %v510_v27 = vpop.f32.mrf.mxu1  ;;  %v620_v28 = vsel %vm540_vm6, %v505_v10, %v604_v26 }
 0x254   : > { %v511_v29 = vadd.f32 %v2536_v16, %v510_v27  ;;  %v636_v30 = vmul.f32 1.050701, %v620_v28 }
 0x256   : > { %v1877_v31 = vpop.eup %1876  ;;  %v566_v32 = vmul.f32 1.442695, %v511_v29  ;;  %697 = vmatmul.f32.gmra.mxu2 %v636_v30  ;;  %vm542_vm8 = vcmp.gt.f32.partialorder %v511_v29, 0.0 }
 0x257   : > { %v1714_v33 = vadd.f32 -1.0, %v1877_v31 }
 0x258   : > { %1878 = vpow2.f32 %v566_v32 }
 0x259   : > { %v605_v34 = vmul.f32 1.6732632, %v1714_v33 }
 0x25b   : > { %v513_v35 = vpop.f32.mrf.mxu1  ;;  %v621_v36 = vsel %vm541_vm7, %v508_v21, %v605_v34 }
 0x25c   : > { %v514_v37 = vadd.f32 %v2536_v16, %v513_v35  ;;  %v637_v38 = vmul.f32 1.050701, %v621_v36 }
 0x25e   : > { %v1879_v39 = vpop.eup %1878  ;;  %v568_v40 = vmul.f32 1.442695, %v514_v37  ;;  %700 = vmatmul.f32.gmra.mxu2 %v637_v38  ;;  %vm543_vm9 = vcmp.gt.f32.partialorder %v514_v37, 0.0 }
 0x25f   : > { %v1715_v41 = vadd.f32 -1.0, %v1879_v39 }
 0x260   : > { %1880 = vpow2.f32 %v568_v40 }
 0x261   : > { %v606_v42 = vmul.f32 1.6732632, %v1715_v41 }
 0x263   : > { %v516_v43 = vpop.f32.mrf.mxu1  ;;  %v622_v44 = vsel %vm542_vm8, %v511_v29, %v606_v42 }
 0x264   : > { %v517_v45 = vadd.f32 %v2536_v16, %v516_v43  ;;  %v638_v46 = vmul.f32 1.050701, %v622_v44 }
 0x266   : > { %v1881_v47 = vpop.eup %1880  ;;  %v570_v59 = vmul.f32 1.442695, %v517_v45  ;;  %703 = vmatmul.f32.gmra.mxu2 %v638_v46  ;;  %vm544_vm10 = vcmp.gt.f32.partialorder %v517_v45, 0.0 }
 0x267   : > { %v1716_v60 = vadd.f32 -1.0, %v1881_v47 }
 0x268   : > { %1882 = vpow2.f32 %v570_v59 }
 0x269   : > { %v607_v61 = vmul.f32 1.6732632, %v1716_v60 }
 0x26b   : > { %v519_v62 = vpop.f32.mrf.mxu1  ;;  %v623_v0 = vsel %vm543_vm9, %v514_v37, %v607_v61 }
 0x26c   : > { %v520_v1 = vadd.f32 %v2536_v16, %v519_v62  ;;  %v639_v2 = vmul.f32 1.050701, %v623_v0 }
 0x26e   : > { %v1883_v4 = vpop.eup %1882  ;;  %v572_v5 = vmul.f32 1.442695, %v520_v1  ;;  %706 = vmatmul.f32.gmra.mxu2 %v639_v2  ;;  %vm545_vm11 = vcmp.gt.f32.partialorder %v520_v1, 0.0 }
 0x26f   : > { %v1717_v6 = vadd.f32 -1.0, %v1883_v4 }
 0x270   : > { %1884 = vpow2.f32 %v572_v5 }
 0x271   : > { %v608_v7 = vmul.f32 1.6732632, %v1717_v6 }
 0x273   : > { %v522_v9 = vpop.f32.mrf.mxu1  ;;  %v624_v10 = vsel %vm544_vm10, %v517_v45, %v608_v7 }
 0x274   : > { %v523_v11 = vadd.f32 %v2536_v16, %v522_v9  ;;  %v640_v12 = vmul.f32 1.050701, %v624_v10 }
 0x276   : > { %v1885_v14 = vpop.eup %1884  ;;  %v574_v17 = vmul.f32 1.442695, %v523_v11  ;;  %709 = vmatmul.f32.gmra.mxu2 %v640_v12  ;;  %vm546_vm12 = vcmp.gt.f32.partialorder %v523_v11, 0.0 }
 0x277   : > { %v1718_v18 = vadd.f32 -1.0, %v1885_v14 }
 0x278   : > { %1886 = vpow2.f32 %v574_v17 }
 0x279   : > { %v609_v19 = vmul.f32 1.6732632, %v1718_v18 }
 0x27b   : > { %v525_v20 = vpop.f32.mrf.mxu1  ;;  %v625_v21 = vsel %vm545_vm11, %v520_v1, %v609_v19  ;;  %v909_v19 = vld [vmem:[#allocation8 + $0x118] sm:$0xff] }
 0x27c   : > { %v526_v22 = vadd.f32 %v2536_v16, %v525_v20  ;;  %v641_v23 = vmul.f32 1.050701, %v625_v21  ;;  %v907_v20 = vld [vmem:[#allocation8 + $0x108] sm:$0xff]  ;;  %v906_v21 = vld [vmem:[#allocation8 + $0x100] sm:$0xff] }
 0x27e   : > { %v1887_v24 = vpop.eup %1886  ;;  %v576_v25 = vmul.f32 1.442695, %v526_v22  ;;  %712 = vmatmul.f32.gmra.mxu2 %v641_v23  ;;  %vm547_vm13 = vcmp.gt.f32.partialorder %v526_v22, 0.0 }
 0x27f   : > { %v1719_v26 = vadd.f32 -1.0, %v1887_v24 }
 0x280   : > { %1888 = vpow2.f32 %v576_v25 }
 0x281   : > { %v610_v27 = vmul.f32 1.6732632, %v1719_v26 }
 0x283   : > { %v528_v28 = vpop.f32.mrf.mxu1  ;;  %v626_v29 = vsel %vm546_vm12, %v523_v11, %v610_v27 }
 0x284   : > { %v529_v30 = vadd.f32 %v2536_v16, %v528_v28  ;;  %v642_v31 = vmul.f32 1.050701, %v626_v29 }
 0x286   : > { %v1889_v32 = vpop.eup %1888  ;;  %v578_v33 = vmul.f32 1.442695, %v529_v30  ;;  %715 = vmatmul.f32.gmra.mxu2 %v642_v31  ;;  %vm548_vm14 = vcmp.gt.f32.partialorder %v529_v30, 0.0 }
 0x287   : > { %v1720_v34 = vadd.f32 -1.0, %v1889_v32 }
 0x288   : > { %1890 = vpow2.f32 %v578_v33 }
 0x289   : > { %v611_v35 = vmul.f32 1.6732632, %v1720_v34 }
 0x28b   : > { %v531_v36 = vpop.f32.mrf.mxu1  ;;  %v627_v37 = vsel %vm547_vm13, %v526_v22, %v611_v35  ;;  %v2570_v22 = vld [vmem:[#allocation10 + $0x1] ss:$0 sm:$0xff] }
 0x28c   : > { %v532_v38 = vadd.f32 %v2536_v16, %v531_v36  ;;  %v643_v39 = vmul.f32 1.050701, %v627_v37 }
 0x28e   : > { %v1891_v40 = vpop.eup %1890  ;;  %v580_v41 = vmul.f32 1.442695, %v532_v38  ;;  %718 = vmatmul.f32.gmra.mxu2 %v643_v39  ;;  %vm549_vm15 = vcmp.gt.f32.partialorder %v532_v38, 0.0 }
 0x28f   : > { %v1721_v42 = vadd.f32 -1.0, %v1891_v40 }
 0x290   : > { %1892 = vpow2.f32 %v580_v41 }
 0x291   : > { %v612_v43 = vmul.f32 1.6732632, %v1721_v42 }
 0x293   : > { %v628_v44 = vsel %vm548_vm14, %v529_v30, %v612_v43 }
 0x294   : > { %v644_v45 = vmul.f32 1.050701, %v628_v44 }
 0x296   : > { %v1893_v46 = vpop.eup %1892  ;;  %721 = vmatmul.f32.gmra.mxu2 %v644_v45 }
 0x297   : > { %v1722_v47 = vadd.f32 -1.0, %v1893_v46 }
 0x299   : > { %v613_v59 = vmul.f32 1.6732632, %v1722_v47 }
 0x29b   : > { %v629_v60 = vsel %vm549_vm15, %v532_v38, %v613_v59 }
 0x29c   : > { %v645_v61 = vmul.f32 1.050701, %v629_v60 }
 0x29e   : > { %724 = vmatmul.f32.gmra.mxu2 %v645_v61 }
 0x2a9   : > { %v680_v62 = vpop.f32.mrf.mxu2 }
 0x2b1   : > { %v683_v16 = vpop.f32.mrf.mxu2 }
 0x2b9   : > { %v686_v0 = vpop.f32.mrf.mxu2 }
 0x2c1   : > { %v689_v1 = vpop.f32.mrf.mxu2 }
 0x2c9   : > { %v692_v2 = vpop.f32.mrf.mxu2 }
 0x2d1   : > { %v695_v4 = vpop.f32.mrf.mxu2 }
 0x2d9   : > { %v698_v5 = vpop.f32.mrf.mxu2 }
 0x2e1   : > { %v701_v6 = vpop.f32.mrf.mxu2 }
 0x2e9   : > { %v704_v7 = vpop.f32.mrf.mxu2 }
 0x2f1   : > { %v707_v9 = vpop.f32.mrf.mxu2 }
 0x2f9   : > { %v710_v10 = vpop.f32.mrf.mxu2 }
 0x301   : > { %v713_v11 = vpop.f32.mrf.mxu2 }
 0x309   : > { %v716_v12 = vpop.f32.mrf.mxu2 }
 0x311   : > { %v719_v14 = vpop.f32.mrf.mxu2 }
 0x319   : > { %v722_v17 = vpop.f32.mrf.mxu2 }
 0x321   : > { %v725_v18 = vpop.f32.mrf.mxu2 }
 0x322   : > { %729 = vmatpush.msra.mxu3 %v725_v18 }
 0x324   : > { %730 = vmatpush.msra.mxu3 %v722_v17 }
 0x326   : > { %731 = vmatpush.msra.mxu3 %v719_v14 }
 0x328   : > { %732 = vmatpush.msra.mxu3 %v716_v12 }
 0x32a   : > { %733 = vmatpush.msra.mxu3 %v713_v11 }
 0x32c   : > { %734 = vmatpush.msra.mxu3 %v710_v10 }
 0x32e   : > { %735 = vmatpush.msra.mxu3 %v707_v9 }
 0x330   : > { %736 = vmatpush.msra.mxu3 %v704_v7 }
 0x332   : > { %737 = vmatpush.msra.mxu3 %v701_v6 }
 0x334   : > { %738 = vmatpush.msra.mxu3 %v698_v5 }
 0x336   : > { %739 = vmatpush.msra.mxu3 %v695_v4 }
 0x338   : > { %740 = vmatpush.msra.mxu3 %v692_v2 }
 0x33a   : > { %741 = vmatpush.msra.mxu3 %v689_v1 }
 0x33c   : > { %742 = vmatpush.msra.mxu3 %v686_v0 }
 0x33e   : > { %743 = vmatpush.msra.mxu3 %v683_v16 }
 0x340   : > { %744 = vmatpush.msra.mxu3 %v680_v62 }
 0x341   : > { %745 = vmatmul.f32.vlgmr.msra.gmra.mxu3 %v2473_v48  ;;  %v921_v48 = vld [vmem:[#allocation8 + $0x178] sm:$0xff] }
 0x342   : > { %923 = vmatpush.msrb.mxu0 %v921_v48 }
 0x349   : > { %748 = vmatmul.f32.gmra.mxu3 %v2477_v49  ;;  %v920_v49 = vld [vmem:[#allocation8 + $0x170] sm:$0xff] }
 0x34a   : > { %924 = vmatpush.msrb.mxu0 %v920_v49 }
 0x351   : > { %751 = vmatmul.f32.gmra.mxu3 %v2481_v50  ;;  %v919_v50 = vld [vmem:[#allocation8 + $0x168] sm:$0xff] }
 0x352   : > { %925 = vmatpush.msrb.mxu0 %v919_v50 }
 0x359   : > { %754 = vmatmul.f32.gmra.mxu3 %v2485_v51  ;;  %v918_v51 = vld [vmem:[#allocation8 + $0x160] sm:$0xff] }
 0x35a   : > { %926 = vmatpush.msrb.mxu0 %v918_v51 }
 0x361   : > { %757 = vmatmul.f32.gmra.mxu3 %v2489_v52  ;;  %v917_v52 = vld [vmem:[#allocation8 + $0x158] sm:$0xff] }
 0x362   : > { %927 = vmatpush.msrb.mxu0 %v917_v52 }
 0x369   : > { %760 = vmatmul.f32.gmra.mxu3 %v2493_v53  ;;  %v916_v53 = vld [vmem:[#allocation8 + $0x150] sm:$0xff] }
 0x36a   : > { %928 = vmatpush.msrb.mxu0 %v916_v53 }
 0x371   : > { %763 = vmatmul.f32.gmra.mxu3 %v2497_v54  ;;  %v915_v54 = vld [vmem:[#allocation8 + $0x148] sm:$0xff] }
 0x372   : > { %929 = vmatpush.msrb.mxu0 %v915_v54 }
 0x379   : > { %766 = vmatmul.f32.gmra.mxu3 %v2501_v55  ;;  %v914_v55 = vld [vmem:[#allocation8 + $0x140] sm:$0xff] }
 0x37a   : > { %930 = vmatpush.msrb.mxu0 %v914_v55 }
 0x381   : > { %769 = vmatmul.f32.gmra.mxu3 %v2505_v56  ;;  %v913_v56 = vld [vmem:[#allocation8 + $0x138] sm:$0xff] }
 0x382   : > { %931 = vmatpush.msrb.mxu0 %v913_v56 }
 0x389   : > { %772 = vmatmul.f32.gmra.mxu3 %v2509_v57  ;;  %v912_v57 = vld [vmem:[#allocation8 + $0x130] sm:$0xff] }
 0x38a   : > { %932 = vmatpush.msrb.mxu0 %v912_v57 }
 0x391   : > { %775 = vmatmul.f32.gmra.mxu3 %v2513_v58  ;;  %v911_v58 = vld [vmem:[#allocation8 + $0x128] sm:$0xff] }
 0x392   : > { %933 = vmatpush.msrb.mxu0 %v911_v58 }
 0x399   : > { %778 = vmatmul.f32.gmra.mxu3 %v2517_v63  ;;  %v910_v63 = vld [vmem:[#allocation8 + $0x120] sm:$0xff] }
 0x39a   : > { %934 = vmatpush.msrb.mxu0 %v910_v63 }
 0x39c   : > { %935 = vmatpush.msrb.mxu0 %v909_v19 }
 0x3a1   : > { %781 = vmatmul.f32.gmra.mxu3 %v2521_v3  ;;  %v908_v3 = vld [vmem:[#allocation8 + $0x110] sm:$0xff] }
 0x3a2   : > { %936 = vmatpush.msrb.mxu0 %v908_v3 }
 0x3a4   : > { %937 = vmatpush.msrb.mxu0 %v907_v20 }
 0x3a6   : > { %938 = vmatpush.msrb.mxu0 %v906_v21 }
 0x3a9   : > { %784 = vmatmul.f32.gmra.mxu3 %v2525_v8 }
 0x3b1   : > { %787 = vmatmul.f32.gmra.mxu3 %v2529_v13 }
 0x3b9   : > { %790 = vmatmul.f32.gmra.mxu3 %v2533_v15 }
 0x3c4   : > { %v746_v8 = vpop.f32.mrf.mxu3 }
 0x3c5   : > { %v747_v23 = vadd.f32 %v2570_v22, %v746_v8 }
 0x3c7   : > { %v810_v24 = vmul.f32 1.442695, %v747_v23  ;;  %vm794_vm0 = vcmp.gt.f32.partialorder %v747_v23, 0.0 }
 0x3c9   : > { %1894 = vpow2.f32 %v810_v24 }
 0x3cc   : > { %v749_v25 = vpop.f32.mrf.mxu3 }
 0x3cd   : > { %v750_v26 = vadd.f32 %v2570_v22, %v749_v25 }
 0x3cf   : > { %v1895_v27 = vpop.eup %1894  ;;  %v812_v13 = vmul.f32 1.442695, %v750_v26  ;;  %vm795_vm1 = vcmp.gt.f32.partialorder %v750_v26, 0.0 }
 0x3d0   : > { %v1723_v28 = vadd.f32 -1.0, %v1895_v27 }
 0x3d1   : > { %1896 = vpow2.f32 %v812_v13 }
 0x3d2   : > { %v858_v29 = vmul.f32 1.6732632, %v1723_v28 }
 0x3d4   : > { %v752_v30 = vpop.f32.mrf.mxu3  ;;  %v874_v31 = vsel %vm794_vm0, %v747_v23, %v858_v29 }
 0x3d5   : > { %v753_v15 = vadd.f32 %v2570_v22, %v752_v30  ;;  %v890_v32 = vmul.f32 1.050701, %v874_v31 }
 0x3d7   : > { %v1897_v33 = vpop.eup %1896  ;;  %v814_v34 = vmul.f32 1.442695, %v753_v15  ;;  %939 = vmatmul.f32.vlgmr.msrb.gmra.mxu0 %v890_v32  ;;  %vm796_vm2 = vcmp.gt.f32.partialorder %v753_v15, 0.0 }
 0x3d8   : > { %v1724_v35 = vadd.f32 -1.0, %v1897_v33 }
 0x3d9   : > { %1898 = vpow2.f32 %v814_v34 }
 0x3da   : > { %v859_v36 = vmul.f32 1.6732632, %v1724_v35 }
 0x3dc   : > { %v755_v37 = vpop.f32.mrf.mxu3  ;;  %v875_v38 = vsel %vm795_vm1, %v750_v26, %v859_v36 }
 0x3dd   : > { %v756_v39 = vadd.f32 %v2570_v22, %v755_v37  ;;  %v891_v40 = vmul.f32 1.050701, %v875_v38 }
 0x3df   : > { %v1899_v41 = vpop.eup %1898  ;;  %v816_v42 = vmul.f32 1.442695, %v756_v39  ;;  %942 = vmatmul.f32.gmra.mxu0 %v891_v40  ;;  %vm797_vm3 = vcmp.gt.f32.partialorder %v756_v39, 0.0 }
 0x3e0   : > { %v1725_v43 = vadd.f32 -1.0, %v1899_v41 }
 0x3e1   : > { %1900 = vpow2.f32 %v816_v42 }
 0x3e2   : > { %v860_v44 = vmul.f32 1.6732632, %v1725_v43 }
 0x3e4   : > { %v758_v45 = vpop.f32.mrf.mxu3  ;;  %v876_v46 = vsel %vm796_vm2, %v753_v15, %v860_v44 }
 0x3e5   : > { %v759_v47 = vadd.f32 %v2570_v22, %v758_v45  ;;  %v892_v59 = vmul.f32 1.050701, %v876_v46 }
 0x3e7   : > { %v1901_v60 = vpop.eup %1900  ;;  %v818_v61 = vmul.f32 1.442695, %v759_v47  ;;  %945 = vmatmul.f32.gmra.mxu0 %v892_v59  ;;  %vm798_vm4 = vcmp.gt.f32.partialorder %v759_v47, 0.0 }
 0x3e8   : > { %v1726_v62 = vadd.f32 -1.0, %v1901_v60 }
 0x3e9   : > { %1902 = vpow2.f32 %v818_v61 }
 0x3ea   : > { %v861_v16 = vmul.f32 1.6732632, %v1726_v62 }
 0x3ec   : > { %v761_v0 = vpop.f32.mrf.mxu3  ;;  %v877_v1 = vsel %vm797_vm3, %v756_v39, %v861_v16 }
 0x3ed   : > { %v762_v2 = vadd.f32 %v2570_v22, %v761_v0  ;;  %v893_v4 = vmul.f32 1.050701, %v877_v1 }
 0x3ef   : > { %v1903_v5 = vpop.eup %1902  ;;  %v820_v6 = vmul.f32 1.442695, %v762_v2  ;;  %948 = vmatmul.f32.gmra.mxu0 %v893_v4  ;;  %vm799_vm5 = vcmp.gt.f32.partialorder %v762_v2, 0.0 }
 0x3f0   : > { %v1727_v7 = vadd.f32 -1.0, %v1903_v5 }
 0x3f1   : > { %1904 = vpow2.f32 %v820_v6 }
 0x3f2   : > { %v862_v9 = vmul.f32 1.6732632, %v1727_v7 }
 0x3f4   : > { %v764_v10 = vpop.f32.mrf.mxu3  ;;  %v878_v11 = vsel %vm798_vm4, %v759_v47, %v862_v9 }
 0x3f5   : > { %v765_v12 = vadd.f32 %v2570_v22, %v764_v10  ;;  %v894_v14 = vmul.f32 1.050701, %v878_v11 }
 0x3f7   : > { %v1905_v17 = vpop.eup %1904  ;;  %v822_v18 = vmul.f32 1.442695, %v765_v12  ;;  %951 = vmatmul.f32.gmra.mxu0 %v894_v14  ;;  %vm800_vm6 = vcmp.gt.f32.partialorder %v765_v12, 0.0 }
 0x3f8   : > { %v1728_v48 = vadd.f32 -1.0, %v1905_v17 }
 0x3f9   : > { %1906 = vpow2.f32 %v822_v18 }
 0x3fa   : > { %v863_v49 = vmul.f32 1.6732632, %v1728_v48 }
 0x3fc   : > { %v767_v50 = vpop.f32.mrf.mxu3  ;;  %v879_v51 = vsel %vm799_vm5, %v762_v2, %v863_v49 }
 0x3fd   : > { %v768_v52 = vadd.f32 %v2570_v22, %v767_v50  ;;  %v895_v53 = vmul.f32 1.050701, %v879_v51 }
 0x3ff   : > { %v1907_v54 = vpop.eup %1906  ;;  %v824_v55 = vmul.f32 1.442695, %v768_v52  ;;  %954 = vmatmul.f32.gmra.mxu0 %v895_v53  ;;  %vm801_vm7 = vcmp.gt.f32.partialorder %v768_v52, 0.0 }
 0x400   : > { %v1729_v56 = vadd.f32 -1.0, %v1907_v54 }
 0x401   : > { %1908 = vpow2.f32 %v824_v55 }
 0x402   : > { %v864_v57 = vmul.f32 1.6732632, %v1729_v56 }
 0x404   : > { %v770_v58 = vpop.f32.mrf.mxu3  ;;  %v880_v63 = vsel %vm800_vm6, %v765_v12, %v864_v57 }
 0x405   : > { %v771_v19 = vadd.f32 %v2570_v22, %v770_v58  ;;  %v896_v3 = vmul.f32 1.050701, %v880_v63 }
 0x407   : > { %v1909_v20 = vpop.eup %1908  ;;  %v826_v21 = vmul.f32 1.442695, %v771_v19  ;;  %957 = vmatmul.f32.gmra.mxu0 %v896_v3  ;;  %vm802_vm8 = vcmp.gt.f32.partialorder %v771_v19, 0.0 }
 0x408   : > { %v1730_v8 = vadd.f32 -1.0, %v1909_v20 }
 0x409   : > { %1910 = vpow2.f32 %v826_v21 }
 0x40a   : > { %v865_v23 = vmul.f32 1.6732632, %v1730_v8 }
 0x40c   : > { %v773_v24 = vpop.f32.mrf.mxu3  ;;  %v881_v25 = vsel %vm801_vm7, %v768_v52, %v865_v23 }
 0x40d   : > { %v774_v26 = vadd.f32 %v2570_v22, %v773_v24  ;;  %v897_v27 = vmul.f32 1.050701, %v881_v25 }
 0x40f   : > { %v1911_v13 = vpop.eup %1910  ;;  %v828_v28 = vmul.f32 1.442695, %v774_v26  ;;  %960 = vmatmul.f32.gmra.mxu0 %v897_v27  ;;  %vm803_vm9 = vcmp.gt.f32.partialorder %v774_v26, 0.0 }
 0x410   : > { %v1731_v29 = vadd.f32 -1.0, %v1911_v13 }
 0x411   : > { %1912 = vpow2.f32 %v828_v28 }
 0x412   : > { %v866_v30 = vmul.f32 1.6732632, %v1731_v29 }
 0x414   : > { %v776_v31 = vpop.f32.mrf.mxu3  ;;  %v882_v15 = vsel %vm802_vm8, %v771_v19, %v866_v30 }
 0x415   : > { %v777_v32 = vadd.f32 %v2570_v22, %v776_v31  ;;  %v898_v33 = vmul.f32 1.050701, %v882_v15 }
 0x417   : > { %v1913_v34 = vpop.eup %1912  ;;  %v830_v35 = vmul.f32 1.442695, %v777_v32  ;;  %963 = vmatmul.f32.gmra.mxu0 %v898_v33  ;;  %vm804_vm10 = vcmp.gt.f32.partialorder %v777_v32, 0.0 }
 0x418   : > { %v1732_v36 = vadd.f32 -1.0, %v1913_v34 }
 0x419   : > { %1914 = vpow2.f32 %v830_v35 }
 0x41a   : > { %v867_v37 = vmul.f32 1.6732632, %v1732_v36 }
 0x41c   : > { %v779_v38 = vpop.f32.mrf.mxu3  ;;  %v883_v39 = vsel %vm803_vm9, %v774_v26, %v867_v37  ;;  %v2589_v37 = vld [vmem:[%s2434_s8] sm:$0xff] }
 0x41d   : > { %v780_v40 = vadd.f32 %v2570_v22, %v779_v38  ;;  %v899_v41 = vmul.f32 1.050701, %v883_v39  ;;  %v2593_v38 = vld [vmem:[%s2434_s8 + $0x8] sm:$0xff]  ;;  %v2597_v39 = vld [vmem:[%s2434_s8 + $0x10] sm:$0xff] }
 0x41f   : > { %v1915_v42 = vpop.eup %1914  ;;  %v832_v43 = vmul.f32 1.442695, %v780_v40  ;;  %966 = vmatmul.f32.gmra.mxu0 %v899_v41  ;;  %vm805_vm11 = vcmp.gt.f32.partialorder %v780_v40, 0.0  ;;  %v2605_v41 = vld [vmem:[%s2434_s8 + $0x20] sm:$0xff] }
 0x420   : > { %v1733_v44 = vadd.f32 -1.0, %v1915_v42  ;;  %v2609_v42 = vld [vmem:[%s2434_s8 + $0x28] sm:$0xff] }
 0x421   : > { %1916 = vpow2.f32 %v832_v43  ;;  %v2613_v43 = vld [vmem:[%s2434_s8 + $0x30] sm:$0xff] }
 0x422   : > { %v868_v45 = vmul.f32 1.6732632, %v1733_v44  ;;  %v2617_v44 = vld [vmem:[%s2434_s8 + $0x38] sm:$0xff] }
 0x424   : > { %v782_v46 = vpop.f32.mrf.mxu3  ;;  %v884_v47 = vsel %vm804_vm10, %v777_v32, %v868_v45  ;;  %v2621_v45 = vld [vmem:[%s2434_s8 + $0x40] sm:$0xff] }
 0x425   : > { %v783_v59 = vadd.f32 %v2570_v22, %v782_v46  ;;  %v900_v60 = vmul.f32 1.050701, %v884_v47  ;;  %v2625_v46 = vld [vmem:[%s2434_s8 + $0x48] sm:$0xff]  ;;  %v2629_v47 = vld [vmem:[%s2434_s8 + $0x50] sm:$0xff] }
 0x427   : > { %v1917_v61 = vpop.eup %1916  ;;  %v834_v62 = vmul.f32 1.442695, %v783_v59  ;;  %969 = vmatmul.f32.gmra.mxu0 %v900_v60  ;;  %vm806_vm12 = vcmp.gt.f32.partialorder %v783_v59, 0.0  ;;  %v1180_v60 = vld [vmem:[#allocation8 + $0x1f0] sm:$0xff] }
 0x428   : > { %v1734_v16 = vadd.f32 -1.0, %v1917_v61  ;;  %v1179_v61 = vld [vmem:[#allocation8 + $0x1e8] sm:$0xff] }
 0x429   : > { %1918 = vpow2.f32 %v834_v62  ;;  %v1178_v62 = vld [vmem:[#allocation8 + $0x1e0] sm:$0xff] }
 0x42a   : > { %v869_v0 = vmul.f32 1.6732632, %v1734_v16  ;;  %v2633_v16 = vld [vmem:[%s2434_s8 + $0x58] sm:$0xff] }
 0x42c   : > { %v785_v1 = vpop.f32.mrf.mxu3  ;;  %v885_v2 = vsel %vm805_vm11, %v780_v40, %v869_v0  ;;  %v2601_v40 = vld [vmem:[%s2434_s8 + $0x18] sm:$0xff]  ;;  %v1177_v0 = vld [vmem:[#allocation8 + $0x1d8] sm:$0xff] }
 0x42d   : > { %v786_v4 = vadd.f32 %v2570_v22, %v785_v1  ;;  %v901_v5 = vmul.f32 1.050701, %v885_v2  ;;  %v1176_v1 = vld [vmem:[#allocation8 + $0x1d0] sm:$0xff]  ;;  %v1175_v2 = vld [vmem:[#allocation8 + $0x1c8] sm:$0xff] }
 0x42f   : > { %v1919_v6 = vpop.eup %1918  ;;  %v836_v7 = vmul.f32 1.442695, %v786_v4  ;;  %972 = vmatmul.f32.gmra.mxu0 %v901_v5  ;;  %vm807_vm13 = vcmp.gt.f32.partialorder %v786_v4, 0.0  ;;  %v2637_v5 = vld [vmem:[%s2434_s8 + $0x60] sm:$0xff] }
 0x430   : > { %v1735_v9 = vadd.f32 -1.0, %v1919_v6  ;;  %v1173_v6 = vld [vmem:[#allocation8 + $0x1b8] sm:$0xff] }
 0x431   : > { %1920 = vpow2.f32 %v836_v7  ;;  %v1172_v7 = vld [vmem:[#allocation8 + $0x1b0] sm:$0xff] }
 0x432   : > { %v870_v10 = vmul.f32 1.6732632, %v1735_v9  ;;  %v1171_v9 = vld [vmem:[#allocation8 + $0x1a8] sm:$0xff] }
 0x434   : > { %v788_v11 = vpop.f32.mrf.mxu3  ;;  %v886_v12 = vsel %vm806_vm12, %v783_v59, %v870_v10  ;;  %v1181_v59 = vld [vmem:[#allocation8 + $0x1f8] sm:$0xff]  ;;  %v1170_v10 = vld [vmem:[#allocation8 + $0x1a0] sm:$0xff] }
 0x435   : > { %v789_v14 = vadd.f32 %v2570_v22, %v788_v11  ;;  %v902_v17 = vmul.f32 1.050701, %v886_v12  ;;  %1183 = vmatpush.msrb.mxu2 %v1181_v59  ;;  %v2641_v11 = vld [vmem:[%s2434_s8 + $0x68] sm:$0xff] }
 0x436   : > { %v1169_v12 = vld [vmem:[#allocation8 + $0x198] sm:$0xff] }
 0x437   : > { %v1921_v18 = vpop.eup %1920  ;;  %v838_v48 = vmul.f32 1.442695, %v789_v14  ;;  %975 = vmatmul.f32.gmra.mxu0 %v902_v17  ;;  %vm808_vm14 = vcmp.gt.f32.partialorder %v789_v14, 0.0  ;;  %1184 = vmatpush.msrb.mxu2 %v1180_v60  ;;  %v1167_v17 = vld [vmem:[#allocation8 + $0x188] sm:$0xff] }
 0x438   : > { %v1736_v49 = vadd.f32 -1.0, %v1921_v18  ;;  %v1166_v18 = vld [vmem:[#allocation8 + $0x180] sm:$0xff] }
 0x439   : > { %1922 = vpow2.f32 %v838_v48  ;;  %1185 = vmatpush.msrb.mxu2 %v1179_v61  ;;  %v2645_v48 = vld [vmem:[%s2434_s8 + $0x70] sm:$0xff] }
 0x43a   : > { %v871_v50 = vmul.f32 1.6732632, %v1736_v49  ;;  %v2649_v49 = vld [vmem:[%s2434_s8 + $0x78] sm:$0xff] }
 0x43b   : > { %1186 = vmatpush.msrb.mxu2 %v1178_v62 }
 0x43c   : > { %v791_v51 = vpop.f32.mrf.mxu3  ;;  %v887_v52 = vsel %vm807_vm13, %v786_v4, %v871_v50  ;;  %v1174_v4 = vld [vmem:[#allocation8 + $0x1c0] sm:$0xff] }
 0x43d   : > { %v792_v53 = vadd.f32 %v2570_v22, %v791_v51  ;;  %v903_v54 = vmul.f32 1.050701, %v887_v52  ;;  %1187 = vmatpush.msrb.mxu2 %v1177_v0  ;;  %v2652_v50 = vld [vmem:[#allocation10 + $0x2] ss:$0 sm:$0xff] }
 0x43f   : > { %v1923_v55 = vpop.eup %1922  ;;  %v840_v56 = vmul.f32 1.442695, %v792_v53  ;;  %978 = vmatmul.f32.gmra.mxu0 %v903_v54  ;;  %vm809_vm15 = vcmp.gt.f32.partialorder %v792_v53, 0.0  ;;  %1188 = vmatpush.msrb.mxu2 %v1176_v1 }
 0x440   : > { %v1737_v57 = vadd.f32 -1.0, %v1923_v55 }
 0x441   : > { %1924 = vpow2.f32 %v840_v56  ;;  %1189 = vmatpush.msrb.mxu2 %v1175_v2 }
 0x442   : > { %v872_v58 = vmul.f32 1.6732632, %v1737_v57 }
 0x443   : > { %1190 = vmatpush.msrb.mxu2 %v1174_v4 }
 0x444   : > { %v888_v63 = vsel %vm808_vm14, %v789_v14, %v872_v58  ;;  %v1168_v14 = vld [vmem:[#allocation8 + $0x190] sm:$0xff] }
 0x445   : > { %v904_v19 = vmul.f32 1.050701, %v888_v63  ;;  %1191 = vmatpush.msrb.mxu2 %v1173_v6 }
 0x447   : > { %v1925_v3 = vpop.eup %1924  ;;  %981 = vmatmul.f32.gmra.mxu0 %v904_v19  ;;  %1192 = vmatpush.msrb.mxu2 %v1172_v7 }
 0x448   : > { %v1738_v20 = vadd.f32 -1.0, %v1925_v3 }
 0x449   : > { %1193 = vmatpush.msrb.mxu2 %v1171_v9 }
 0x44a   : > { %v873_v21 = vmul.f32 1.6732632, %v1738_v20 }
 0x44b   : > { %1194 = vmatpush.msrb.mxu2 %v1170_v10 }
 0x44c   : > { %v889_v8 = vsel %vm809_vm15, %v792_v53, %v873_v21 }
 0x44d   : > { %v905_v23 = vmul.f32 1.050701, %v889_v8  ;;  %1195 = vmatpush.msrb.mxu2 %v1169_v12 }
 0x44f   : > { %984 = vmatmul.f32.gmra.mxu0 %v905_v23  ;;  %1196 = vmatpush.msrb.mxu2 %v1168_v14 }
 0x451   : > { %1197 = vmatpush.msrb.mxu2 %v1167_v17 }
 0x453   : > { %1198 = vmatpush.msrb.mxu2 %v1166_v18 }
 0x454   : > { %v940_v24 = vpop.f32.mrf.mxu0 }
 0x45c   : > { %v943_v22 = vpop.f32.mrf.mxu0 }
 0x464   : > { %v946_v25 = vpop.f32.mrf.mxu0 }
 0x46c   : > { %v949_v26 = vpop.f32.mrf.mxu0 }
 0x474   : > { %v952_v27 = vpop.f32.mrf.mxu0 }
 0x47c   : > { %v955_v13 = vpop.f32.mrf.mxu0 }
 0x484   : > { %v958_v28 = vpop.f32.mrf.mxu0 }
 0x48c   : > { %v961_v29 = vpop.f32.mrf.mxu0 }
 0x494   : > { %v964_v30 = vpop.f32.mrf.mxu0 }
 0x49c   : > { %v967_v31 = vpop.f32.mrf.mxu0 }
 0x4a4   : > { %v970_v15 = vpop.f32.mrf.mxu0 }
 0x4ac   : > { %v973_v32 = vpop.f32.mrf.mxu0 }
 0x4b4   : > { %v976_v33 = vpop.f32.mrf.mxu0 }
 0x4bc   : > { %v979_v34 = vpop.f32.mrf.mxu0 }
 0x4c4   : > { %v982_v35 = vpop.f32.mrf.mxu0 }
 0x4cc   : > { %v985_v36 = vpop.f32.mrf.mxu0 }
 0x4cd   : > { %989 = vmatpush.msrb.mxu1 %v985_v36 }
 0x4cf   : > { %990 = vmatpush.msrb.mxu1 %v982_v35 }
 0x4d1   : > { %991 = vmatpush.msrb.mxu1 %v979_v34 }
 0x4d3   : > { %992 = vmatpush.msrb.mxu1 %v976_v33 }
 0x4d5   : > { %993 = vmatpush.msrb.mxu1 %v973_v32 }
 0x4d7   : > { %994 = vmatpush.msrb.mxu1 %v970_v15 }
 0x4d9   : > { %995 = vmatpush.msrb.mxu1 %v967_v31 }
 0x4db   : > { %996 = vmatpush.msrb.mxu1 %v964_v30 }
 0x4dd   : > { %997 = vmatpush.msrb.mxu1 %v961_v29 }
 0x4df   : > { %998 = vmatpush.msrb.mxu1 %v958_v28 }
 0x4e1   : > { %999 = vmatpush.msrb.mxu1 %v955_v13 }
 0x4e3   : > { %1000 = vmatpush.msrb.mxu1 %v952_v27 }
 0x4e5   : > { %1001 = vmatpush.msrb.mxu1 %v949_v26 }
 0x4e7   : > { %1002 = vmatpush.msrb.mxu1 %v946_v25 }
 0x4e9   : > { %1003 = vmatpush.msrb.mxu1 %v943_v22 }
 0x4eb   : > { %1004 = vmatpush.msrb.mxu1 %v940_v24 }
 0x4ec   : > { %1005 = vmatmul.f32.vlgmr.msrb.gmra.mxu1 %v2589_v37 }
 0x4f4   : > { %1008 = vmatmul.f32.gmra.mxu1 %v2593_v38 }
 0x4fc   : > { %1011 = vmatmul.f32.gmra.mxu1 %v2597_v39 }
 0x504   : > { %1014 = vmatmul.f32.gmra.mxu1 %v2601_v40 }
 0x50c   : > { %1017 = vmatmul.f32.gmra.mxu1 %v2605_v41 }
 0x514   : > { %1020 = vmatmul.f32.gmra.mxu1 %v2609_v42 }
 0x51c   : > { %1023 = vmatmul.f32.gmra.mxu1 %v2613_v43 }
 0x524   : > { %1026 = vmatmul.f32.gmra.mxu1 %v2617_v44 }
 0x52c   : > { %1029 = vmatmul.f32.gmra.mxu1 %v2621_v45 }
 0x534   : > { %1032 = vmatmul.f32.gmra.mxu1 %v2625_v46 }
 0x53c   : > { %1035 = vmatmul.f32.gmra.mxu1 %v2629_v47 }
 0x544   : > { %1038 = vmatmul.f32.gmra.mxu1 %v2633_v16 }
 0x54c   : > { %1041 = vmatmul.f32.gmra.mxu1 %v2637_v5 }
 0x554   : > { %1044 = vmatmul.f32.gmra.mxu1 %v2641_v11 }
 0x55c   : > { %1047 = vmatmul.f32.gmra.mxu1 %v2645_v48 }
 0x564   : > { %1050 = vmatmul.f32.gmra.mxu1 %v2649_v49 }
 0x569   : > { %v1006_v51 = vpop.f32.mrf.mxu1 }
 0x56a   : > { %v1007_v52 = vadd.f32 %v2652_v50, %v1006_v51 }
 0x56c   : > { %v1070_v53 = vmul.f32 1.442695, %v1007_v52  ;;  %vm1054_vm0 = vcmp.gt.f32.partialorder %v1007_v52, 0.0 }
 0x56e   : > { %1926 = vpow2.f32 %v1070_v53 }
 0x571   : > { %v1009_v54 = vpop.f32.mrf.mxu1 }
 0x572   : > { %v1010_v55 = vadd.f32 %v2652_v50, %v1009_v54 }
 0x574   : > { %v1927_v56 = vpop.eup %1926  ;;  %v1072_v57 = vmul.f32 1.442695, %v1010_v55  ;;  %vm1055_vm1 = vcmp.gt.f32.partialorder %v1010_v55, 0.0 }
 0x575   : > { %v1739_v58 = vadd.f32 -1.0, %v1927_v56 }
 0x576   : > { %1928 = vpow2.f32 %v1072_v57 }
 0x577   : > { %v1118_v63 = vmul.f32 1.6732632, %v1739_v58 }
 0x579   : > { %v1012_v19 = vpop.f32.mrf.mxu1  ;;  %v1134_v3 = vsel %vm1054_vm0, %v1007_v52, %v1118_v63 }
 0x57a   : > { %v1013_v20 = vadd.f32 %v2652_v50, %v1012_v19  ;;  %v1150_v21 = vmul.f32 1.050701, %v1134_v3 }
 0x57c   : > { %v1929_v8 = vpop.eup %1928  ;;  %v1074_v23 = vmul.f32 1.442695, %v1013_v20  ;;  %1199 = vmatmul.f32.vlgmr.msrb.gmra.mxu2 %v1150_v21  ;;  %vm1056_vm2 = vcmp.gt.f32.partialorder %v1013_v20, 0.0 }
 0x57d   : > { %v1740_v24 = vadd.f32 -1.0, %v1929_v8 }
 0x57e   : > { %1930 = vpow2.f32 %v1074_v23 }
 0x57f   : > { %v1119_v22 = vmul.f32 1.6732632, %v1740_v24 }
 0x581   : > { %v1015_v25 = vpop.f32.mrf.mxu1  ;;  %v1135_v26 = vsel %vm1055_vm1, %v1010_v55, %v1119_v22 }
 0x582   : > { %v1016_v27 = vadd.f32 %v2652_v50, %v1015_v25  ;;  %v1151_v13 = vmul.f32 1.050701, %v1135_v26 }
 0x584   : > { %v1931_v28 = vpop.eup %1930  ;;  %v1076_v29 = vmul.f32 1.442695, %v1016_v27  ;;  %1202 = vmatmul.f32.gmra.mxu2 %v1151_v13  ;;  %vm1057_vm3 = vcmp.gt.f32.partialorder %v1016_v27, 0.0 }
 0x585   : > { %v1741_v30 = vadd.f32 -1.0, %v1931_v28 }
 0x586   : > { %1932 = vpow2.f32 %v1076_v29 }
 0x587   : > { %v1120_v31 = vmul.f32 1.6732632, %v1741_v30 }
 0x589   : > { %v1018_v15 = vpop.f32.mrf.mxu1  ;;  %v1136_v32 = vsel %vm1056_vm2, %v1013_v20, %v1120_v31 }
 0x58a   : > { %v1019_v33 = vadd.f32 %v2652_v50, %v1018_v15  ;;  %v1152_v34 = vmul.f32 1.050701, %v1136_v32 }
 0x58c   : > { %v1933_v35 = vpop.eup %1932  ;;  %v1078_v36 = vmul.f32 1.442695, %v1019_v33  ;;  %1205 = vmatmul.f32.gmra.mxu2 %v1152_v34  ;;  %vm1058_vm4 = vcmp.gt.f32.partialorder %v1019_v33, 0.0 }
 0x58d   : > { %v1742_v59 = vadd.f32 -1.0, %v1933_v35 }
 0x58e   : > { %1934 = vpow2.f32 %v1078_v36 }
 0x58f   : > { %v1121_v60 = vmul.f32 1.6732632, %v1742_v59 }
 0x591   : > { %v1021_v61 = vpop.f32.mrf.mxu1  ;;  %v1137_v62 = vsel %vm1057_vm3, %v1016_v27, %v1121_v60 }
 0x592   : > { %v1022_v0 = vadd.f32 %v2652_v50, %v1021_v61  ;;  %v1153_v1 = vmul.f32 1.050701, %v1137_v62 }
 0x594   : > { %v1935_v2 = vpop.eup %1934  ;;  %v1080_v4 = vmul.f32 1.442695, %v1022_v0  ;;  %1208 = vmatmul.f32.gmra.mxu2 %v1153_v1  ;;  %vm1059_vm5 = vcmp.gt.f32.partialorder %v1022_v0, 0.0 }
 0x595   : > { %v1743_v6 = vadd.f32 -1.0, %v1935_v2 }
 0x596   : > { %1936 = vpow2.f32 %v1080_v4 }
 0x597   : > { %v1122_v7 = vmul.f32 1.6732632, %v1743_v6 }
 0x599   : > { %v1024_v9 = vpop.f32.mrf.mxu1  ;;  %v1138_v10 = vsel %vm1058_vm4, %v1019_v33, %v1122_v7 }
 0x59a   : > { %v1025_v12 = vadd.f32 %v2652_v50, %v1024_v9  ;;  %v1154_v14 = vmul.f32 1.050701, %v1138_v10 }
 0x59c   : > { %v1937_v17 = vpop.eup %1936  ;;  %v1082_v18 = vmul.f32 1.442695, %v1025_v12  ;;  %1211 = vmatmul.f32.gmra.mxu2 %v1154_v14  ;;  %vm1060_vm6 = vcmp.gt.f32.partialorder %v1025_v12, 0.0 }
 0x59d   : > { %v1744_v51 = vadd.f32 -1.0, %v1937_v17 }
 0x59e   : > { %1938 = vpow2.f32 %v1082_v18 }
 0x59f   : > { %v1123_v52 = vmul.f32 1.6732632, %v1744_v51 }
 0x5a1   : > { %v1027_v53 = vpop.f32.mrf.mxu1  ;;  %v1139_v54 = vsel %vm1059_vm5, %v1022_v0, %v1123_v52 }
 0x5a2   : > { %v1028_v55 = vadd.f32 %v2652_v50, %v1027_v53  ;;  %v1155_v56 = vmul.f32 1.050701, %v1139_v54 }
 0x5a4   : > { %v1939_v57 = vpop.eup %1938  ;;  %v1084_v58 = vmul.f32 1.442695, %v1028_v55  ;;  %1214 = vmatmul.f32.gmra.mxu2 %v1155_v56  ;;  %vm1061_vm7 = vcmp.gt.f32.partialorder %v1028_v55, 0.0 }
 0x5a5   : > { %v1745_v63 = vadd.f32 -1.0, %v1939_v57 }
 0x5a6   : > { %1940 = vpow2.f32 %v1084_v58 }
 0x5a7   : > { %v1124_v19 = vmul.f32 1.6732632, %v1745_v63 }
 0x5a9   : > { %v1030_v3 = vpop.f32.mrf.mxu1  ;;  %v1140_v20 = vsel %vm1060_vm6, %v1025_v12, %v1124_v19 }
 0x5aa   : > { %v1031_v21 = vadd.f32 %v2652_v50, %v1030_v3  ;;  %v1156_v8 = vmul.f32 1.050701, %v1140_v20 }
 0x5ac   : > { %v1941_v23 = vpop.eup %1940  ;;  %v1086_v24 = vmul.f32 1.442695, %v1031_v21  ;;  %1217 = vmatmul.f32.gmra.mxu2 %v1156_v8  ;;  %vm1062_vm8 = vcmp.gt.f32.partialorder %v1031_v21, 0.0 }
 0x5ad   : > { %v1746_v22 = vadd.f32 -1.0, %v1941_v23 }
 0x5ae   : > { %1942 = vpow2.f32 %v1086_v24 }
 0x5af   : > { %v1125_v25 = vmul.f32 1.6732632, %v1746_v22 }
 0x5b1   : > { %v1033_v26 = vpop.f32.mrf.mxu1  ;;  %v1141_v27 = vsel %vm1061_vm7, %v1028_v55, %v1125_v25 }
 0x5b2   : > { %v1034_v13 = vadd.f32 %v2652_v50, %v1033_v26  ;;  %v1157_v28 = vmul.f32 1.050701, %v1141_v27 }
 0x5b4   : > { %v1943_v29 = vpop.eup %1942  ;;  %v1088_v30 = vmul.f32 1.442695, %v1034_v13  ;;  %1220 = vmatmul.f32.gmra.mxu2 %v1157_v28  ;;  %vm1063_vm9 = vcmp.gt.f32.partialorder %v1034_v13, 0.0 }
 0x5b5   : > { %v1747_v31 = vadd.f32 -1.0, %v1943_v29 }
 0x5b6   : > { %1944 = vpow2.f32 %v1088_v30 }
 0x5b7   : > { %v1126_v15 = vmul.f32 1.6732632, %v1747_v31 }
 0x5b9   : > { %v1036_v32 = vpop.f32.mrf.mxu1  ;;  %v1142_v33 = vsel %vm1062_vm8, %v1031_v21, %v1126_v15 }
 0x5ba   : > { %v1037_v34 = vadd.f32 %v2652_v50, %v1036_v32  ;;  %v1158_v35 = vmul.f32 1.050701, %v1142_v33 }
 0x5bc   : > { %v1945_v36 = vpop.eup %1944  ;;  %v1090_v59 = vmul.f32 1.442695, %v1037_v34  ;;  %1223 = vmatmul.f32.gmra.mxu2 %v1158_v35  ;;  %vm1064_vm10 = vcmp.gt.f32.partialorder %v1037_v34, 0.0 }
 0x5bd   : > { %v1748_v60 = vadd.f32 -1.0, %v1945_v36 }
 0x5be   : > { %1946 = vpow2.f32 %v1090_v59 }
 0x5bf   : > { %v1127_v61 = vmul.f32 1.6732632, %v1748_v60 }
 0x5c1   : > { %v1039_v62 = vpop.f32.mrf.mxu1  ;;  %v1143_v0 = vsel %vm1063_vm9, %v1034_v13, %v1127_v61 }
 0x5c2   : > { %v1040_v1 = vadd.f32 %v2652_v50, %v1039_v62  ;;  %v1159_v2 = vmul.f32 1.050701, %v1143_v0 }
 0x5c4   : > { %v1947_v4 = vpop.eup %1946  ;;  %v1092_v6 = vmul.f32 1.442695, %v1040_v1  ;;  %1226 = vmatmul.f32.gmra.mxu2 %v1159_v2  ;;  %vm1065_vm11 = vcmp.gt.f32.partialorder %v1040_v1, 0.0 }
 0x5c5   : > { %v1749_v7 = vadd.f32 -1.0, %v1947_v4 }
 0x5c6   : > { %1948 = vpow2.f32 %v1092_v6 }
 0x5c7   : > { %v1128_v9 = vmul.f32 1.6732632, %v1749_v7 }
 0x5c9   : > { %v1042_v10 = vpop.f32.mrf.mxu1  ;;  %v1144_v12 = vsel %vm1064_vm10, %v1037_v34, %v1128_v9 }
 0x5ca   : > { %v1043_v14 = vadd.f32 %v2652_v50, %v1042_v10  ;;  %v1160_v17 = vmul.f32 1.050701, %v1144_v12 }
 0x5cc   : > { %v1949_v18 = vpop.eup %1948  ;;  %v1094_v51 = vmul.f32 1.442695, %v1043_v14  ;;  %1229 = vmatmul.f32.gmra.mxu2 %v1160_v17  ;;  %vm1066_vm12 = vcmp.gt.f32.partialorder %v1043_v14, 0.0 }
 0x5cd   : > { %v1750_v52 = vadd.f32 -1.0, %v1949_v18 }
 0x5ce   : > { %1950 = vpow2.f32 %v1094_v51 }
 0x5cf   : > { %v1129_v53 = vmul.f32 1.6732632, %v1750_v52 }
 0x5d1   : > { %v1045_v54 = vpop.f32.mrf.mxu1  ;;  %v1145_v55 = vsel %vm1065_vm11, %v1040_v1, %v1129_v53 }
 0x5d2   : > { %v1046_v56 = vadd.f32 %v2652_v50, %v1045_v54  ;;  %v1161_v57 = vmul.f32 1.050701, %v1145_v55 }
 0x5d4   : > { %v1951_v58 = vpop.eup %1950  ;;  %v1096_v63 = vmul.f32 1.442695, %v1046_v56  ;;  %1232 = vmatmul.f32.gmra.mxu2 %v1161_v57  ;;  %vm1067_vm13 = vcmp.gt.f32.partialorder %v1046_v56, 0.0 }
 0x5d5   : > { %v1751_v19 = vadd.f32 -1.0, %v1951_v58 }
 0x5d6   : > { %1952 = vpow2.f32 %v1096_v63 }
 0x5d7   : > { %v1130_v3 = vmul.f32 1.6732632, %v1751_v19 }
 0x5d9   : > { %v1048_v20 = vpop.f32.mrf.mxu1  ;;  %v1146_v21 = vsel %vm1066_vm12, %v1043_v14, %v1130_v3 }
 0x5da   : > { %v1049_v8 = vadd.f32 %v2652_v50, %v1048_v20  ;;  %v1162_v23 = vmul.f32 1.050701, %v1146_v21 }
 0x5dc   : > { %v1953_v24 = vpop.eup %1952  ;;  %v1098_v22 = vmul.f32 1.442695, %v1049_v8  ;;  %1235 = vmatmul.f32.gmra.mxu2 %v1162_v23  ;;  %vm1068_vm14 = vcmp.gt.f32.partialorder %v1049_v8, 0.0 }
 0x5dd   : > { %v1752_v25 = vadd.f32 -1.0, %v1953_v24 }
 0x5de   : > { %1954 = vpow2.f32 %v1098_v22 }
 0x5df   : > { %v1131_v26 = vmul.f32 1.6732632, %v1752_v25 }
 0x5e1   : > { %v1051_v27 = vpop.f32.mrf.mxu1  ;;  %v1147_v13 = vsel %vm1067_vm13, %v1046_v56, %v1131_v26 }
 0x5e2   : > { %v1052_v28 = vadd.f32 %v2652_v50, %v1051_v27  ;;  %v1163_v29 = vmul.f32 1.050701, %v1147_v13 }
 0x5e4   : > { %v1955_v30 = vpop.eup %1954  ;;  %v1100_v31 = vmul.f32 1.442695, %v1052_v28  ;;  %1238 = vmatmul.f32.gmra.mxu2 %v1163_v29  ;;  %vm1069_vm15 = vcmp.gt.f32.partialorder %v1052_v28, 0.0 }
 0x5e5   : > { %v1753_v15 = vadd.f32 -1.0, %v1955_v30 }
 0x5e6   : > { %1956 = vpow2.f32 %v1100_v31 }
 0x5e7   : > { %v1132_v32 = vmul.f32 1.6732632, %v1753_v15 }
 0x5e9   : > { %v1148_v33 = vsel %vm1068_vm14, %v1049_v8, %v1132_v32 }
 0x5ea   : > { %v1164_v34 = vmul.f32 1.050701, %v1148_v33 }
 0x5ec   : > { %v1957_v35 = vpop.eup %1956  ;;  %1241 = vmatmul.f32.gmra.mxu2 %v1164_v34 }
 0x5ed   : > { %v1754_v36 = vadd.f32 -1.0, %v1957_v35 }
 0x5ef   : > { %v1133_v59 = vmul.f32 1.6732632, %v1754_v36 }
 0x5f1   : > { %v1149_v60 = vsel %vm1069_vm15, %v1052_v28, %v1133_v59 }
 0x5f2   : > { %v1165_v61 = vmul.f32 1.050701, %v1149_v60 }
 0x5f4   : > { %1244 = vmatmul.f32.gmra.mxu2 %v1165_v61 }
 0x5ff   : > { %v1200_v62 = vpop.f32.mrf.mxu2 }
 0x607   : > { %v1203_v50 = vpop.f32.mrf.mxu2 }
 0x60f   : > { %v1206_v0 = vpop.f32.mrf.mxu2 }
 0x617   : > { %v1209_v1 = vpop.f32.mrf.mxu2 }
 0x61f   : > { %v1212_v2 = vpop.f32.mrf.mxu2 }
 0x627   : > { %v1215_v4 = vpop.f32.mrf.mxu2 }
 0x62f   : > { %v1218_v6 = vpop.f32.mrf.mxu2 }
 0x637   : > { %v1221_v7 = vpop.f32.mrf.mxu2 }
 0x63f   : > { %v1224_v9 = vpop.f32.mrf.mxu2 }
 0x647   : > { %v1227_v10 = vpop.f32.mrf.mxu2 }
 0x64f   : > { %v1230_v12 = vpop.f32.mrf.mxu2 }
 0x657   : > { %v1233_v14 = vpop.f32.mrf.mxu2 }
 0x65f   : > { %v1236_v17 = vpop.f32.mrf.mxu2 }
 0x667   : > { %v1239_v18 = vpop.f32.mrf.mxu2 }
 0x66f   : > { %v1242_v51 = vpop.f32.mrf.mxu2 }
 0x677   : > { %v1245_v52 = vpop.f32.mrf.mxu2 }
 0x678   : > { %1249 = vmatpush.msrb.mxu3 %v1245_v52 }
 0x67a   : > { %1250 = vmatpush.msrb.mxu3 %v1242_v51 }
 0x67c   : > { %1251 = vmatpush.msrb.mxu3 %v1239_v18 }
 0x67e   : > { %1252 = vmatpush.msrb.mxu3 %v1236_v17 }
 0x680   : > { %1253 = vmatpush.msrb.mxu3 %v1233_v14 }
 0x682   : > { %1254 = vmatpush.msrb.mxu3 %v1230_v12 }
 0x684   : > { %1255 = vmatpush.msrb.mxu3 %v1227_v10 }
 0x686   : > { %1256 = vmatpush.msrb.mxu3 %v1224_v9 }
 0x688   : > { %1257 = vmatpush.msrb.mxu3 %v1221_v7 }
 0x68a   : > { %1258 = vmatpush.msrb.mxu3 %v1218_v6 }
 0x68c   : > { %1259 = vmatpush.msrb.mxu3 %v1215_v4 }
 0x68e   : > { %1260 = vmatpush.msrb.mxu3 %v1212_v2 }
 0x690   : > { %1261 = vmatpush.msrb.mxu3 %v1209_v1 }
 0x692   : > { %1262 = vmatpush.msrb.mxu3 %v1206_v0 }
 0x694   : > { %1263 = vmatpush.msrb.mxu3 %v1203_v50 }
 0x696   : > { %1264 = vmatpush.msrb.mxu3 %v1200_v62 }
 0x697   : > { %1265 = vmatmul.f32.vlgmr.msrb.gmra.mxu3 %v2589_v37 }
 0x69f   : > { %1268 = vmatmul.f32.gmra.mxu3 %v2593_v38 }
 0x6a7   : > { %1271 = vmatmul.f32.gmra.mxu3 %v2597_v39 }
 0x6af   : > { %1274 = vmatmul.f32.gmra.mxu3 %v2601_v40 }
 0x6b7   : > { %1277 = vmatmul.f32.gmra.mxu3 %v2605_v41 }
 0x6bf   : > { %1280 = vmatmul.f32.gmra.mxu3 %v2609_v42 }
 0x6c7   : > { %1283 = vmatmul.f32.gmra.mxu3 %v2613_v43 }
 0x6cf   : > { %1286 = vmatmul.f32.gmra.mxu3 %v2617_v44 }
 0x6d7   : > { %1289 = vmatmul.f32.gmra.mxu3 %v2621_v45 }
 0x6df   : > { %1292 = vmatmul.f32.gmra.mxu3 %v2625_v46 }
 0x6e7   : > { %1295 = vmatmul.f32.gmra.mxu3 %v2629_v47 }
 0x6ef   : > { %1298 = vmatmul.f32.gmra.mxu3 %v2633_v16 }
 0x6f7   : > { %1301 = vmatmul.f32.gmra.mxu3 %v2637_v5 }
 0x6ff   : > { %1304 = vmatmul.f32.gmra.mxu3 %v2641_v11  ;;  %v2688_v11 = vld [vmem:[#allocation10 + $0x3] ss:$0 sm:$0xff] }
 0x707   : > { %1307 = vmatmul.f32.gmra.mxu3 %v2645_v48 }
 0x70f   : > { %1310 = vmatmul.f32.gmra.mxu3 %v2649_v49 }
 0x71a   : > { %v2686_v37 = vpop.f32.mrf.mxu3 }
 0x722   : > { %v1269_v38 = vpop.f32.mrf.mxu3 }
 0x723   : > { %v2731_v0 = vadd.f32 %v2688_v11, %v1269_v38 }
 0x725   : > { %vm1315_vm14 = vcmp.gt.f32.partialorder %v2731_v0, 0.0 }
 0x72a   : > { %v1272_v39 = vpop.f32.mrf.mxu3 }
 0x72b   : > { %v2738_v4 = vadd.f32 %v2688_v11, %v1272_v39 }
 0x72d   : > { %vm1316_vm13 = vcmp.gt.f32.partialorder %v2738_v4, 0.0 }
 0x732   : > { %v1275_v40 = vpop.f32.mrf.mxu3 }
 0x733   : > { %v2734_v1 = vadd.f32 %v2688_v11, %v1275_v40  ;;  %v2745_v40 = vadd.f32 %v2688_v11, %v2686_v37  ;;  %v1332_v37 = vmul.f32 1.442695, %v2731_v0 }
 0x735   : > { %v1336_v38 = vmul.f32 1.442695, %v2734_v1  ;;  %vm1317_vm12 = vcmp.gt.f32.partialorder %v2734_v1, 0.0  ;;  %vm1314_vm15 = vcmp.gt.f32.partialorder %v2745_v40, 0.0 }
 0x73a   : > { %v1278_v41 = vpop.f32.mrf.mxu3 }
 0x73b   : > { %v2727_v36 = vadd.f32 %v2688_v11, %v1278_v41 }
 0x73d   : > { %v1338_v12 = vmul.f32 1.442695, %v2727_v36  ;;  %vm1318_vm11 = vcmp.gt.f32.partialorder %v2727_v36, 0.0 }
 0x742   : > { %v1281_v42 = vpop.f32.mrf.mxu3 }
 0x743   : > { %v2723_v15 = vadd.f32 %v2688_v11, %v1281_v42 }
 0x745   : > { %v1340_v2 = vmul.f32 1.442695, %v2723_v15  ;;  %vm1319_vm10 = vcmp.gt.f32.partialorder %v2723_v15, 0.0 }
 0x74a   : > { %v1284_v43 = vpop.f32.mrf.mxu3 }
 0x74b   : > { %v2719_v28 = vadd.f32 %v2688_v11, %v1284_v43 }
 0x74d   : > { %v1342_v59 = vmul.f32 1.442695, %v2719_v28  ;;  %vm1320_vm9 = vcmp.gt.f32.partialorder %v2719_v28, 0.0 }
 0x752   : > { %v1287_v44 = vpop.f32.mrf.mxu3 }
 0x753   : > { %v2715_v26 = vadd.f32 %v2688_v11, %v1287_v44 }
 0x755   : > { %v1344_v32 = vmul.f32 1.442695, %v2715_v26  ;;  %vm1321_vm8 = vcmp.gt.f32.partialorder %v2715_v26, 0.0 }
 0x75a   : > { %v1290_v45 = vpop.f32.mrf.mxu3 }
 0x75b   : > { %v2711_v23 = vadd.f32 %v2688_v11, %v1290_v45  ;;  %v1334_v45 = vmul.f32 1.442695, %v2738_v4 }
 0x75d   : > { %v1346_v29 = vmul.f32 1.442695, %v2711_v23  ;;  %vm1322_vm7 = vcmp.gt.f32.partialorder %v2711_v23, 0.0 }
 0x762   : > { %v1293_v46 = vpop.f32.mrf.mxu3 }
 0x763   : > { %v2707_v21 = vadd.f32 %v2688_v11, %v1293_v46 }
 0x765   : > { %v1348_v27 = vmul.f32 1.442695, %v2707_v21  ;;  %vm1323_vm6 = vcmp.gt.f32.partialorder %v2707_v21, 0.0 }
 0x76a   : > { %v1296_v47 = vpop.f32.mrf.mxu3 }
 0x76b   : > { %v2702_v63 = vadd.f32 %v2688_v11, %v1296_v47 }
 0x76d   : > { %v1350_v24 = vmul.f32 1.442695, %v2702_v63  ;;  %vm1324_vm5 = vcmp.gt.f32.partialorder %v2702_v63, 0.0 }
 0x772   : > { %v1299_v16 = vpop.f32.mrf.mxu3 }
 0x773   : > { %v2698_v57 = vadd.f32 %v2688_v11, %v1299_v16 }
 0x775   : > { %v1352_v3 = vmul.f32 1.442695, %v2698_v57  ;;  %vm1325_vm4 = vcmp.gt.f32.partialorder %v2698_v57, 0.0 }
 0x77a   : > { %v1302_v5 = vpop.f32.mrf.mxu3 }
 0x77b   : > { %v2695_v55 = vadd.f32 %v2688_v11, %v1302_v5 }
 0x77d   : > { %v1354_v19 = vmul.f32 1.442695, %v2695_v55  ;;  %vm1326_vm3 = vcmp.gt.f32.partialorder %v2695_v55, 0.0 }
 0x782   : > { %v1305_v53 = vpop.f32.mrf.mxu3 }
 0x783   : > { %v2691_v49 = vadd.f32 %v2688_v11, %v1305_v53 }
 0x785   : > { %v1356_v58 = vmul.f32 1.442695, %v2691_v49  ;;  %vm1327_vm2 = vcmp.gt.f32.partialorder %v2691_v49, 0.0 }
 0x78a   : > { %v1308_v48 = vpop.f32.mrf.mxu3 }
 0x78b   : > { %v1309_v54 = vadd.f32 %v2688_v11, %v1308_v48 }
 0x78d   : > { %v1358_v56 = vmul.f32 1.442695, %v1309_v54  ;;  %vm1328_vm0 = vcmp.gt.f32.partialorder %v1309_v54, 0.0 }
 0x78f   : > { %1958 = vpow2.f32 %v1358_v56 }
 0x790   : > { %1960 = vpow2.f32 %v1356_v58  ;;  %v1330_v58 = vmul.f32 1.442695, %v2745_v40 }
 0x791   : > { %1962 = vpow2.f32 %v1354_v19 }
 0x792   : > { %v1311_v20 = vpop.f32.mrf.mxu3  ;;  %1964 = vpow2.f32 %v1352_v3 }
 0x793   : > { %v1312_v8 = vadd.f32 %v2688_v11, %v1311_v20 }
 0x795   : > { %v1360_v22 = vmul.f32 1.442695, %v1312_v8  ;;  %v1959_v25 = vpop.eup %1958  ;;  %vm1329_vm1 = vcmp.gt.f32.partialorder %v1312_v8, 0.0 }
 0x796   : > { %v1961_v13 = vpop.eup %1960  ;;  %v1769_v30 = vadd.f32 -1.0, %v1959_v25 }
 0x797   : > { %1966 = vpow2.f32 %v1360_v22  ;;  %v1963_v31 = vpop.eup %1962  ;;  %v1768_v34 = vadd.f32 -1.0, %v1961_v13 }
 0x798   : > { %1968 = vpow2.f32 %v1350_v24  ;;  %v1965_v33 = vpop.eup %1964  ;;  %v1767_v60 = vadd.f32 -1.0, %v1963_v31  ;;  %v1392_v61 = vmul.f32 1.6732632, %v1769_v30 }
 0x799   : > { %1970 = vpow2.f32 %v1348_v27  ;;  %v1766_v6 = vadd.f32 -1.0, %v1965_v33  ;;  %v1391_v7 = vmul.f32 1.6732632, %v1768_v34 }
 0x79a   : > { %1972 = vpow2.f32 %v1346_v29  ;;  %v1390_v17 = vmul.f32 1.6732632, %v1767_v60  ;;  %v1408_v51 = vsel %vm1328_vm0, %v1309_v54, %v1392_v61 }
 0x79b   : > { %1974 = vpow2.f32 %v1344_v32  ;;  %v1389_v42 = vmul.f32 1.6732632, %v1766_v6  ;;  %v1407_v43 = vsel %vm1327_vm2, %v2691_v49, %v1391_v7  ;;  %v1424_v46 = vmul.f32 1.050701, %v1408_v51 }
 0x79c   : > { %1976 = vpow2.f32 %v1342_v59  ;;  %v1406_v5 = vsel %vm1326_vm3, %v2695_v55, %v1390_v17  ;;  %v1423_v11 = vmul.f32 1.050701, %v1407_v43 }
 0x79d   : > { %v1967_v35 = vpop.eup %1966  ;;  %1978 = vpow2.f32 %v1340_v2  ;;  %v1405_v54 = vsel %vm1325_vm4, %v2698_v57, %v1389_v42  ;;  %v1422_v55 = vmul.f32 1.050701, %v1406_v5  ;;  %v1426_v42 = vld [vmem:[%s2444_s17] sm:$0xff] }
 0x79e   : > { %v1770_v62 = vadd.f32 -1.0, %v1967_v35  ;;  %v1969_v50 = vpop.eup %1968  ;;  %1980 = vpow2.f32 %v1338_v12  ;;  %v1421_v24 = vmul.f32 1.050701, %v1405_v54  ;;  %v1470_v5 = vld [vmem:[#allocation8 + $0x250] sm:$0xff] }
 0x79f   : > { %v1971_v10 = vpop.eup %1970  ;;  %v1765_v14 = vadd.f32 -1.0, %v1969_v50  ;;  %1982 = vpow2.f32 %v1336_v38 }
 0x7a0   : > { %v1393_v9 = vmul.f32 1.6732632, %v1770_v62  ;;  %v1973_v52 = vpop.eup %1972  ;;  %v1764_v41 = vadd.f32 -1.0, %v1971_v10  ;;  %1984 = vpow2.f32 %v1334_v45 }
 0x7a1   : > { %v1975_v44 = vpop.eup %1974  ;;  %v1763_v47 = vadd.f32 -1.0, %v1973_v52  ;;  %v1388_v16 = vmul.f32 1.6732632, %v1765_v14  ;;  %1986 = vpow2.f32 %v1332_v37  ;;  %v1468_v37 = vld [vmem:[#allocation8 + $0x240] sm:$0xff] }
 0x7a2   : > { %v1409_v18 = vsel %vm1329_vm1, %v1312_v8, %v1393_v9  ;;  %v1977_v53 = vpop.eup %1976  ;;  %v1762_v48 = vadd.f32 -1.0, %v1975_v44  ;;  %v1387_v49 = vmul.f32 1.6732632, %v1764_v41  ;;  %1988 = vpow2.f32 %v1330_v58 }
 0x7a3   : > { %v1425_v39 = vmul.f32 1.050701, %v1409_v18  ;;  %v1979_v56 = vpop.eup %1978  ;;  %v1761_v19 = vadd.f32 -1.0, %v1977_v53  ;;  %v1386_v3 = vmul.f32 1.6732632, %v1763_v47  ;;  %v1404_v20 = vsel %vm1324_vm5, %v2702_v63, %v1388_v16  ;;  %v1473_v47 = vld [vmem:[#allocation8 + $0x268] sm:$0xff] }
 0x7a4   : > { %v1981_v8 = vpop.eup %1980  ;;  %v1760_v22 = vadd.f32 -1.0, %v1979_v56  ;;  %v1385_v57 = vmul.f32 1.6732632, %v1762_v48  ;;  %v1403_v25 = vsel %vm1323_vm6, %v2707_v21, %v1387_v49  ;;  %v1420_v13 = vmul.f32 1.050701, %v1404_v20  ;;  %v1472_v16 = vld [vmem:[#allocation8 + $0x260] sm:$0xff] }
 0x7a5   : > { %1427 = vmatpush.msra.mxu0 %v1425_v39  ;;  %v1983_v27 = vpop.eup %1982  ;;  %v1759_v29 = vadd.f32 -1.0, %v1981_v8  ;;  %v1384_v30 = vmul.f32 1.6732632, %v1761_v19  ;;  %v1402_v63 = vsel %vm1322_vm7, %v2711_v23, %v1386_v3  ;;  %v1419_v32 = vmul.f32 1.050701, %v1403_v25  ;;  %v1469_v53 = vld [vmem:[#allocation8 + $0x248] sm:$0xff] }
 0x7a6   : > { %v1985_v31 = vpop.eup %1984  ;;  %v1758_v33 = vadd.f32 -1.0, %v1983_v27  ;;  %v1383_v34 = vmul.f32 1.6732632, %v1760_v22  ;;  %v1401_v35 = vsel %vm1321_vm8, %v2715_v26, %v1385_v57  ;;  %v1418_v59 = vmul.f32 1.050701, %v1402_v63  ;;  %v1466_v48 = vld [vmem:[#allocation8 + $0x230] sm:$0xff] }
 0x7a7   : > { %1428 = vmatpush.msra.mxu0 %v1424_v46  ;;  %v1987_v21 = vpop.eup %1986  ;;  %v1757_v60 = vadd.f32 -1.0, %v1985_v31  ;;  %v1382_v61 = vmul.f32 1.6732632, %v1759_v29  ;;  %v1400_v62 = vsel %vm1320_vm9, %v2719_v28, %v1384_v30  ;;  %v1417_v23 = vmul.f32 1.050701, %v1401_v35  ;;  %v1474_v46 = vld [vmem:[#allocation8 + $0x270] sm:$0xff] }
 0x7a8   : > { %v1989_v50 = vpop.eup %1988  ;;  %v1756_v2 = vadd.f32 -1.0, %v1987_v21  ;;  %v1381_v6 = vmul.f32 1.6732632, %v1758_v33  ;;  %v1399_v7 = vsel %vm1319_vm10, %v2723_v15, %v1383_v34  ;;  %v1416_v26 = vmul.f32 1.050701, %v1400_v62  ;;  %v1465_v49 = vld [vmem:[#allocation8 + $0x228] sm:$0xff] }
 0x7a9   : > { %1429 = vmatpush.msra.mxu0 %v1423_v11  ;;  %v1755_v9 = vadd.f32 -1.0, %v1989_v50  ;;  %v1380_v10 = vmul.f32 1.6732632, %v1757_v60  ;;  %v1398_v12 = vsel %vm1318_vm11, %v2727_v36, %v1382_v61  ;;  %v1415_v28 = vmul.f32 1.050701, %v1399_v7  ;;  %v1467_v11 = vld [vmem:[#allocation8 + $0x238] sm:$0xff] }
 0x7aa   : > { %v1379_v14 = vmul.f32 1.6732632, %v1756_v2  ;;  %v1397_v17 = vsel %vm1317_vm12, %v2734_v1, %v1381_v6  ;;  %v1414_v15 = vmul.f32 1.050701, %v1398_v12  ;;  %v1464_v19 = vld [vmem:[#allocation8 + $0x220] sm:$0xff]  ;;  %v1463_v3 = vld [vmem:[#allocation8 + $0x218] sm:$0xff] }
 0x7ab   : > { %1430 = vmatpush.msra.mxu0 %v1422_v55  ;;  %v1378_v18 = vmul.f32 1.6732632, %v1755_v9  ;;  %v1396_v51 = vsel %vm1316_vm13, %v2738_v4, %v1380_v10  ;;  %v1413_v52 = vmul.f32 1.050701, %v1397_v17  ;;  %v1447_v4 = vlaneseq  ;;  %v1462_v20 = vld [vmem:[#allocation8 + $0x210] sm:$0xff]  ;;  %v1461_v8 = vld [vmem:[#allocation8 + $0x208] sm:$0xff] }
 0x7ac   : > { %v1395_v36 = vsel %vm1315_vm14, %v2731_v0, %v1379_v14  ;;  %v1412_v38 = vmul.f32 1.050701, %v1396_v51  ;;  %v1475_v0 = vld [vmem:[#allocation8 + $0x278] sm:$0xff]  ;;  %v1513_v57 = vld [vmem:[#allocation8 + $0x2f0] sm:$0xff]  ;;  %v1512_v25 = vld [vmem:[#allocation8 + $0x2e8] sm:$0xff] }
 0x7ad   : > { %1431 = vmatpush.msra.mxu0 %v1421_v24  ;;  %v1394_v1 = vsel %vm1314_vm15, %v2745_v40, %v1378_v18  ;;  %v1411_v39 = vmul.f32 1.050701, %v1395_v36  ;;  %v1448_v43 = vand.u32 127, %v1447_v4  ;;  %1478 = vmatpush.msra.mxu1 %v1475_v0  ;;  %v1471_v40 = vld [vmem:[#allocation8 + $0x258] sm:$0xff]  ;;  %v1460_v24 = vld [vmem:[#allocation8 + $0x200] sm:$0xff]  ;;  %v1509_v29 = vld [vmem:[#allocation8 + $0x2d0] sm:$0xff] }
 0x7ae   : > { %v1410_v41 = vmul.f32 1.050701, %v1394_v1  ;;  %v1514_v22 = vld [vmem:[#allocation8 + $0x2f8] sm:$0xff]  ;;  %v1511_v27 = vld [vmem:[#allocation8 + $0x2e0] sm:$0xff]  ;;  %v1508_v30 = vld [vmem:[#allocation8 + $0x2c8] sm:$0xff] }
 0x7af   : > { %1432 = vmatpush.msra.mxu0 %v1420_v13  ;;  %vm1449_vm0 = vcmp.lt.s32.totalorder %v1448_v43, 36  ;;  %1479 = vmatpush.msra.mxu1 %v1474_v46  ;;  %v1510_v13 = vld [vmem:[#allocation8 + $0x2d8] sm:$0xff]  ;;  %v1507_v63 = vld [vmem:[#allocation8 + $0x2c0] sm:$0xff]  ;;  %v1504_v33 = vld [vmem:[#allocation8 + $0x2a8] sm:$0xff] }
 0x7b0   : > { %1517 = vmatpush.msra.mxu2 %v1514_v22  ;;  %v1506_v31 = vld [vmem:[#allocation8 + $0x2b8] sm:$0xff]  ;;  %v1503_v34 = vld [vmem:[#allocation8 + $0x2a0] sm:$0xff]  ;;  %v1501_v61 = vld [vmem:[#allocation8 + $0x290] sm:$0xff] }
 0x7b1   : > { %1433 = vmatpush.msra.mxu0 %v1419_v32  ;;  %1480 = vmatpush.msra.mxu1 %v1473_v47  ;;  %v1505_v32 = vld [vmem:[#allocation8 + $0x2b0] sm:$0xff]  ;;  %v1502_v21 = vld [vmem:[#allocation8 + $0x298] sm:$0xff]  ;;  %v1500_v62 = vld [vmem:[#allocation8 + $0x288] sm:$0xff] }
 0x7b2   : > { %1518 = vmatpush.msra.mxu2 %v1513_v57  ;;  %v1499_v50 = vld [vmem:[#allocation8 + $0x280] sm:$0xff] }
 0x7b3   : > { %1434 = vmatpush.msra.mxu0 %v1418_v59  ;;  %1481 = vmatpush.msra.mxu1 %v1472_v16 }
 0x7b4   : > { %1519 = vmatpush.msra.mxu2 %v1512_v25 }
 0x7b5   : > { %1435 = vmatpush.msra.mxu0 %v1417_v23  ;;  %1482 = vmatpush.msra.mxu1 %v1471_v40  ;;  %v1860_v23 = vld [vmem:[#allocation10 + $0x4] ss:$0 sm:$0xff] }
 0x7b6   : > { %1520 = vmatpush.msra.mxu2 %v1511_v27 }
 0x7b7   : > { %1436 = vmatpush.msra.mxu0 %v1416_v26  ;;  %1483 = vmatpush.msra.mxu1 %v1470_v5  ;;  %v1861_v26 = vld [vmem:[#allocation10 + $0x5] ss:$0 sm:$0xff] }
 0x7b8   : > { %1521 = vmatpush.msra.mxu2 %v1510_v13 }
 0x7b9   : > { %1437 = vmatpush.msra.mxu0 %v1415_v28  ;;  %1484 = vmatpush.msra.mxu1 %v1469_v53 }
 0x7ba   : > { %1522 = vmatpush.msra.mxu2 %v1509_v29 }
 0x7bb   : > { %1438 = vmatpush.msra.mxu0 %v1414_v15  ;;  %1485 = vmatpush.msra.mxu1 %v1468_v37 }
 0x7bc   : > { %1523 = vmatpush.msra.mxu2 %v1508_v30 }
 0x7bd   : > { %1439 = vmatpush.msra.mxu0 %v1413_v52  ;;  %1486 = vmatpush.msra.mxu1 %v1467_v11 }
 0x7be   : > { %1524 = vmatpush.msra.mxu2 %v1507_v63 }
 0x7bf   : > { %1440 = vmatpush.msra.mxu0 %v1412_v38  ;;  %1487 = vmatpush.msra.mxu1 %v1466_v48 }
 0x7c0   : > { %1525 = vmatpush.msra.mxu2 %v1506_v31 }
 0x7c1   : > { %1441 = vmatpush.msra.mxu0 %v1411_v39  ;;  %1488 = vmatpush.msra.mxu1 %v1465_v49 }
 0x7c2   : > { %1526 = vmatpush.msra.mxu2 %v1505_v32 }
 0x7c3   : > { %1442 = vmatpush.msra.mxu0 %v1410_v41  ;;  %1489 = vmatpush.msra.mxu1 %v1464_v19 }
 0x7c4   : > { %1443 = vmatmul.f32.vlgmr.msra.gmra.mxu0 %v1426_v42  ;;  %1527 = vmatpush.msra.mxu2 %v1504_v33 }
 0x7c5   : > { %1490 = vmatpush.msra.mxu1 %v1463_v3 }
 0x7c6   : > { %1528 = vmatpush.msra.mxu2 %v1503_v34 }
 0x7c7   : > { %1491 = vmatpush.msra.mxu1 %v1462_v20 }
 0x7c8   : > { %1529 = vmatpush.msra.mxu2 %v1502_v21 }
 0x7c9   : > { %1492 = vmatpush.msra.mxu1 %v1461_v8 }
 0x7ca   : > { %1530 = vmatpush.msra.mxu2 %v1501_v61 }
 0x7cb   : > { %1493 = vmatpush.msra.mxu1 %v1460_v24 }
 0x7cc   : > { %1531 = vmatpush.msra.mxu2 %v1500_v62 }
 0x7ce   : > { %1532 = vmatpush.msra.mxu2 %v1499_v50 }
 0x841   : > { %v1444_v44 = vpop.f32.mrf.mxu0 }
 0x842   : > { %v1450_v45 = vsel %vm1449_vm0, %v1444_v44, -1e+30 }
 0x843   : > { %1451 = vmax.xlane.f32.xlu0 %v1450_v45 }
 0x8b6   : > { %v1452_v54 = vpop.xlane.xlu0 %1451 }
 0x8b7   : > { %v1453_v56 = vsub.f32 %v1450_v45, %v1452_v54 }
 0x8b9   : > { %v1454_v58 = vmul.f32 1.442695, %v1453_v56 }
 0x8bb   : > { %1990 = vpow2.f32 %v1454_v58 }
 0x8c1   : > { %v1991_v55 = vpop.eup %1990 }
 0x8c2   : > { %1456 = vadd.xlane.f32.xlu0 %v1991_v55 }
 0x935   : > { %v1457_v35 = vpop.xlane.xlu0 %1456 }
 0x936   : > { %1992 = vrcp.f32 %v1457_v35 }
 0x93c   : > { %v1993_v59 = vpop.eup %1992 }
 0x93d   : > { %v1459_v60 = vmul.f32 %v1993_v59, %v1991_v55 }
 0x93f   : > { %1494 = vmatmul.f32.vlgmr.msra.gmra.mxu1 %v1459_v60 }
 0x9bc   : > { %v1495_v2 = vpop.f32.mrf.mxu1 }
 0x9bd   : > { %v1496_v6 = vadd.f32 %v1860_v23, %v1495_v2 }
 0x9bf   : > { %v1498_v7 = vmax.f32 %v1496_v6, 0.0 }
 0x9c1   : > { %1533 = vmatmul.f32.vlgmr.msra.gmra.mxu2 %v1498_v7 }
 0xa44   : > { %v1534_v9 = vpop.f32.mrf.mxu2 }
 0xa45   : > { %v1535_v10 = vadd.f32 %v1861_v26, %v1534_v9 }
 0xa47   : > { %v1537_v12 = vmax.f32 %v1535_v10, 0.0 }
 0xa49   : > { %1538 = vst [vmem:[%s353_s1] sm:$0xff] %v1537_v12 }
 0xa4a   : > { %2187 = shalt.err (!%p2184_p7)
}
 0xa4b   : > { %1791 = dma.vmem_to_hbm [thread:$0]  (%p2339_p0), %s1553_s14, 128, %s1555_s23, %s1540_s28  }
 0xa4c PF: > { %s1566_s4 = sand.u32 1, %s2222_s18   ;;  %p2846_p10 = scmp.ge.s32.totalorder %s2234_s21, 2 }
 0xa4d   : > { %s1567_s9 = scalar_lea.sflag [#allocation4], %s1566_s4 }
 0xa4e   : > { %p1811_p11 = pnand %p2846_p10, %p2347_p5 }
 0xa50   : > { %p1812_p12 = pneg %p1811_p11 }
 0xa52   : > { %2217 = dma.done.wait (%p1812_p12), %s1567_s9, 128  }
 0xa53   : > { %2219 = vsyncadd (%p1812_p12), %s1567_s9, 4294967168  ;;  %s2847_s21 = sld [smem:[#allocation17_spill]]  ;;  %s2850_s18 = smov %s2226_s19 }
 0xa54   : > { %s2848_s8 = sld [smem:[#allocation16_spill]] }
 0xa55   : > { %s2849_s20 = sld [smem:[#allocation18_spill]] }
 0xa59   : > { %p22_p3 = scmp.ge.s32.totalorder %s2847_s21, 4  }
 0xa5a   : > { %s2851_s19 = smov %s2848_s8 }
 0xa5b   :  { %24 = sbr.rel (!%p22_p3) target bundleno = 12 (0xc), region = 117 }
 0xa60   :  { %1573 = vsyncpa [#allocation3], 1 }
 0xa61   :  { %1575 = vsyncpa [#allocation3 + $0x1], 1 }
 0xa62   :  { %1576 = vsyncpa [#allocation6], 1 }
 0xa63   :  { %1578 = vsyncpa [#allocation6 + $0x1], 1 }
 0xa64   :  { %1579 = vsyncpa [#allocation9], 1 }
 0xa65   :  { %1580 = vsyncpa [#allocation4], 1 }
 0xa66   :  { %1582 = vsyncpa [#allocation4 + $0x1], 1 }

</bundles_post_ra>
